<compile_context>
chip_gen: v6e
topology: v6e:2x2x1
jax: 0.10.0
libtpu: 0.0.40
codegen_flags: <defaults>
</compile_context>

<pallas_src>
import jax
import jax.numpy as jnp
from jax.experimental import pallas as pl
from jax.experimental.pallas import tpu as pltpu

H = 16                 # spectrogram frames
W = 16                 # frequency bins
HW = H * W             # flattened spatial (lane axis) = 256
WIN = 32               # samples per frame (hop == WIN, non-overlapping)
SIG_LEN = H * WIN      # 512-sample input waveform
C_IN = 4               # channels produced by preprocess
C_HID = 8              # resnet hidden channels (stem padded to this, zero weights)
N_CONV = 5             # stem, block1a, block1b, block2a, block2b
K_TAPS = 9             # 3x3 taps, k = (dy+1)*3 + (dx+1)

# Per-tap flat shift on the lane axis (static Python constants).
SHIFTS = tuple(dy * W + dx for dy in (-1, 0, 1) for dx in (-1, 0, 1))


# ----------------------------------------------------------------------------
# Fused Pallas kernel: preprocess + stem conv + 2 residual blocks + GAP/FC/sigmoid
# ----------------------------------------------------------------------------
def ensemble_resnet_kernel(x_ref, cos_ref, sin_ref, mask_ref,
                           wc_ref, bc_ref, wfc_ref, bfc_ref,
                           o_ref, img_scr, col_scr):
    """Whole forward for one sample, fully VMEM-resident.

    x_ref   : (1, SIG_LEN)           raw waveform (per-sample block)
    cos_ref : (SIG_LEN, HW)          block-diagonal framed-DFT cos basis (resident)
    sin_ref : (SIG_LEN, HW)          block-diagonal framed-DFT sin basis (resident)
    mask_ref: (K_TAPS, HW)           3x3 'same'-padding border masks (resident)
    wc_ref  : (N_CONV, C_HID, 9*C_HID) im2col-packed conv weights (resident)
    bc_ref  : (C_HID, N_CONV)        conv biases (resident)
    wfc_ref : (C_HID, 1)             FC head weight
    bfc_ref : (1, 1)                 FC head bias
    o_ref   : (1, 1)                 sigmoid probability
    img_scr : (C_HID, HW)  VMEM      preprocessed image (stem channels zero-padded)
    col_scr : (9*C_HID, HW) VMEM     im2col slab, reused by every conv layer
    """
    # ---- fused preprocess_spectrogram: framed DFT via block-diagonal bases ----
    sig = x_ref[...]                                                    # (1, 512)
    re = jnp.dot(sig, cos_ref[...], preferred_element_type=jnp.float32)  # (1, 256)
    im = jnp.dot(sig, sin_ref[...], preferred_element_type=jnp.float32)  # (1, 256)
    mag = jnp.sqrt(re * re + im * im + 1e-8)

    def inv_absmax(a):                                   # exact per-sample normalizer
        return 1.0 / (jnp.max(jnp.abs(a), axis=1, keepdims=True) + 1e-6)

    img_scr[0:1, :] = jnp.log(1.0 + mag)                 # log-magnitude channel
    img_scr[1:2, :] = mag * inv_absmax(mag)              # normalized magnitude
    img_scr[2:3, :] = re * inv_absmax(re)                # normalized real part
    img_scr[3:4, :] = im * inv_absmax(im)                # normalized imag part
    img_scr[C_IN:C_HID, :] = jnp.zeros((C_HID - C_IN, HW), jnp.float32)

    # ---- 3x3 'same' conv: ONE im2col MXU dot per layer ----
    def conv3x3(x, layer, residual=None, relu=True):
        # Build the (9*C_HID, HW) im2col slab: each tap is an XLU roll of the flat
        # spatial axis, border-masked with the precomputed per-tap mask row.
        for k, d in enumerate(SHIFTS):
            if d == 0:
                tap = x                                   # center tap: no shift/mask
            else:
                # tap[:, p] = x[:, p + d]; wrapped lanes are masked to zero.
                tap = pltpu.roll(x, (-d) % HW, 1) * mask_ref[k:k + 1, :]
            col_scr[k * C_HID:(k + 1) * C_HID, :] = tap
        acc = jnp.dot(wc_ref[layer], col_scr[...],        # (8,72) @ (72,256)
                      preferred_element_type=jnp.float32)
        acc = acc + bc_ref[:, layer:layer + 1]            # (C_HID,1) lane broadcast
        if residual is not None:
            acc = acc + residual
        return jnp.maximum(acc, 0.0) if relu else acc

    x0 = img_scr[...]
    h = conv3x3(x0, 0)                                    # stem
    y = conv3x3(h, 1)                                     # residual block 1
    h = conv3x3(y, 2, residual=h)
    y = conv3x3(h, 3)                                     # residual block 2
    h = conv3x3(y, 4, residual=h)

    # ---- global-average-pool, FC head, exact sigmoid ----
    pooled = jnp.mean(h, axis=1, keepdims=True)                           # (C_HID, 1)
    logit = jnp.sum(pooled * wfc_ref[...], axis=0, keepdims=True) + bfc_ref[...]
    o_ref[...] = 1.0 / (1.0 + jnp.exp(-logit))            # exact: feeds a 1e-4 threshold


# ----------------------------------------------------------------------------
# Wrapper: batched grid, weights/bases resident across the grid
# ----------------------------------------------------------------------------
def resnet_forward(x, params):
    """x: (B, SIG_LEN) waveforms -> (B,) sigmoid probabilities."""
    B = x.shape[0]
    x3 = x.reshape(B, 1, SIG_LEN).astype(jnp.float32)
    probs = pl.pallas_call(
        ensemble_resnet_kernel,
        out_shape=jax.ShapeDtypeStruct((B, 1, 1), jnp.float32),
        grid_spec=pltpu.PrefetchScalarGridSpec(
            num_scalar_prefetch=0,
            grid=(B,),
            in_specs=[
                # per-sample waveform block
                pl.BlockSpec((None, 1, SIG_LEN), lambda b: (b, 0, 0)),
                # constants: constant index map -> DMA'd once, VMEM-resident
                pl.BlockSpec((SIG_LEN, HW), lambda b: (0, 0)),
                pl.BlockSpec((SIG_LEN, HW), lambda b: (0, 0)),
                pl.BlockSpec((K_TAPS, HW), lambda b: (0, 0)),
                pl.BlockSpec((N_CONV, C_HID, K_TAPS * C_HID), lambda b: (0, 0, 0)),
                pl.BlockSpec((C_HID, N_CONV), lambda b: (0, 0)),
                pl.BlockSpec((C_HID, 1), lambda b: (0, 0)),
                pl.BlockSpec((1, 1), lambda b: (0, 0)),
            ],
            out_specs=pl.BlockSpec((None, 1, 1), lambda b: (b, 0, 0)),
            scratch_shapes=[
                pltpu.VMEM((C_HID, HW), jnp.float32),            # preprocessed image
                pltpu.VMEM((K_TAPS * C_HID, HW), jnp.float32),   # im2col slab
            ],
        ),
        compiler_params=pltpu.CompilerParams(
            dimension_semantics=("parallel",)),
    )(x3, params["cos_b"], params["sin_b"], params["tap_mask"],
      params["w_conv"], params["b_conv"], params["w_fc"], params["b_fc"])
    return probs.reshape(B)


def ensemble_forward(x, params):
    """Mirrors EnsembleNetwork.forward per sample; x: (B, SIG_LEN)."""
    _x_in_vec = x[:, 3:-1]          # computed-but-unused, as in the original forward
    return resnet_forward(x, params)


# ----------------------------------------------------------------------------
# Deterministic synthetic parameters, packed once into kernel-ready layouts
# ----------------------------------------------------------------------------
def init_params(key):
    k_conv, k_fc = jax.random.split(key, 2)

    # Conv weights: generated as (layer, k, cout, cin), PyTorch tap order
    # k = ky*3 + kx (cross-correlation), then repacked lane-dense as
    # (layer, cout, k*C_HID + cin) to match the im2col slab row order.
    scale = 1.0 / jnp.sqrt(9.0 * C_HID)
    w = jax.random.normal(k_conv, (N_CONV, K_TAPS, C_HID, C_HID), jnp.float32) * scale
    cin_mask = (jnp.arange(C_HID) < C_IN).astype(jnp.float32)
    w = w.at[0].multiply(cin_mask[None, None, :])        # stem sees only 4 real channels
    w_conv = jnp.transpose(w, (0, 2, 1, 3)).reshape(N_CONV, C_HID, K_TAPS * C_HID)

    # Framed-DFT bases as block-diagonal (SIG_LEN, HW) matrices so the kernel's
    # preprocess is two plain MXU dots producing the lane-dense (1, HW) layout.
    n = jnp.arange(WIN, dtype=jnp.float32)
    k = jnp.arange(W, dtype=jnp.float32)
    ang = 2.0 * jnp.pi * n[:, None] * k[None, :] / WIN               # (WIN, W)
    eye_h = jnp.eye(H, dtype=jnp.float32)
    cos_b = jnp.kron(eye_h, jnp.cos(ang))                            # (512, 256)
    sin_b = jnp.kron(eye_h, jnp.sin(ang))                            # (512, 256)

    # Precomputed 3x3 'same'-padding border masks, one row per tap.
    p = jnp.arange(HW)
    hh, ww = p // W, p % W
    rows = []
    for dy in (-1, 0, 1):
        for dx in (-1, 0, 1):
            ok = (hh + dy >= 0) & (hh + dy < H) & (ww + dx >= 0) & (ww + dx < W)
            rows.append(ok)
    tap_mask = jnp.stack(rows, axis=0).astype(jnp.float32)           # (9, 256)

    return {
        "w_conv": w_conv,                                            # (5, 8, 72)
        "b_conv": jnp.zeros((C_HID, N_CONV), jnp.float32),           # (8, 5)
        "w_fc": jax.random.normal(k_fc, (C_HID, 1), jnp.float32) * 0.1,
        "b_fc": jnp.zeros((1, 1), jnp.float32),
        "cos_b": cos_b,
        "sin_b": sin_b,
        "tap_mask": tap_mask,
    }


if __name__ == "__main__":
    B = 4                                                  # B=1 reproduces the original
    x = jax.random.normal(jax.random.PRNGKey(0), (B, SIG_LEN), jnp.float32)
    params = init_params(jax.random.PRNGKey(42))

    fwd = jax.jit(ensemble_forward)
    probs = jax.block_until_ready(fwd(x, params))

    assert probs.shape == (B,)
    assert bool(jnp.all(jnp.isfinite(probs)))
    assert bool(jnp.all((probs >= 0.0) & (probs <= 1.0)))  # sigmoid output sanity
    # host-side thresholding, mirroring: 1 if float(result_resnet) > 0.0001 else 0
    results = [1 if float(p) > 1e-4 else 0 for p in probs]
    assert all(r in (0, 1) for r in results)
    print("KERNEL_OK")
</pallas_src>

<mosaic_0001>
module attributes {stable_mosaic.version = 11 : i64} {
  func.func @ensemble_resnet_kernel(%arg0: i32, %arg1: memref<1x1x512xf32, #tpu.memory_space<vmem>>, %arg2: memref<512x256xf32, #tpu.memory_space<vmem>>, %arg3: memref<512x256xf32, #tpu.memory_space<vmem>>, %arg4: memref<9x256xf32, #tpu.memory_space<vmem>>, %arg5: memref<5x8x72xf32, #tpu.memory_space<vmem>>, %arg6: memref<8x5xf32, #tpu.memory_space<vmem>>, %arg7: memref<8x1xf32, #tpu.memory_space<vmem>>, %arg8: memref<1x1xf32, #tpu.memory_space<vmem>>, %arg9: memref<1x1x1xf32, #tpu.memory_space<vmem>>, %arg10: memref<8x256xf32, #tpu.memory_space<vmem>>, %arg11: memref<72x256xf32, #tpu.memory_space<vmem>>) attributes {dimension_semantics = [#tpu.dimension_semantics<parallel>], iteration_bounds = array<i64: 4>, scalar_prefetch = 0 : i64, scratch_operands = 2 : i64, tpu.core_type = #tpu.core_type<tc>, window_params = [{transform_indices = @transform_0, window_bounds = array<i64: 1, 1, 512>}, {pipeline_mode = #tpu.pipeline_mode<synchronous>, transform_indices = @transform_1, window_bounds = array<i64: 512, 256>}, {pipeline_mode = #tpu.pipeline_mode<synchronous>, transform_indices = @transform_2, window_bounds = array<i64: 512, 256>}, {pipeline_mode = #tpu.pipeline_mode<synchronous>, transform_indices = @transform_3, window_bounds = array<i64: 9, 256>}, {pipeline_mode = #tpu.pipeline_mode<synchronous>, transform_indices = @transform_4, window_bounds = array<i64: 5, 8, 72>}, {pipeline_mode = #tpu.pipeline_mode<synchronous>, transform_indices = @transform_5, window_bounds = array<i64: 8, 5>}, {pipeline_mode = #tpu.pipeline_mode<synchronous>, transform_indices = @transform_6, window_bounds = array<i64: 8, 1>}, {pipeline_mode = #tpu.pipeline_mode<synchronous>, transform_indices = @transform_7, window_bounds = array<i64: 1, 1>}, {transform_indices = @transform_8, window_bounds = array<i64: 1, 1, 1>}]} {
    %c0 = arith.constant 0 : index
    %c0_0 = arith.constant 0 : index
    %c0_1 = arith.constant 0 : index
    %0 = vector.load %arg1[%c0, %c0_0, %c0_1] : memref<1x1x512xf32, #tpu.memory_space<vmem>>, vector<1x1x512xf32>
    %1 = vector.shape_cast %0 : vector<1x1x512xf32> to vector<1x512xf32>
    %c0_2 = arith.constant 0 : index
    %c0_3 = arith.constant 0 : index
    %2 = vector.load %arg2[%c0_2, %c0_3] : memref<512x256xf32, #tpu.memory_space<vmem>>, vector<512x256xf32>
    %cst = arith.constant dense<0.000000e+00> : vector<1x256xf32>
    %3 = tpu.matmul %1, %2, %cst {dimension_numbers = #tpu.dot_dimension_numbers<[1], [0], [0], [1], [0, 0, 1, 1], [], []>} : vector<1x512xf32>, vector<512x256xf32>, vector<1x256xf32> -> vector<1x256xf32>
    %c0_4 = arith.constant 0 : index
    %c0_5 = arith.constant 0 : index
    %4 = vector.load %arg3[%c0_4, %c0_5] : memref<512x256xf32, #tpu.memory_space<vmem>>, vector<512x256xf32>
    %cst_6 = arith.constant dense<0.000000e+00> : vector<1x256xf32>
    %5 = tpu.matmul %1, %4, %cst_6 {dimension_numbers = #tpu.dot_dimension_numbers<[1], [0], [0], [1], [0, 0, 1, 1], [], []>} : vector<1x512xf32>, vector<512x256xf32>, vector<1x256xf32> -> vector<1x256xf32>
    %6 = arith.mulf %3, %3 : vector<1x256xf32>
    %7 = arith.mulf %5, %5 : vector<1x256xf32>
    %8 = arith.addf %6, %7 : vector<1x256xf32>
    %cst_7 = arith.constant 9.99999993E-9 : f32
    %9 = vector.broadcast %cst_7 : f32 to vector<1x256xf32>
    %10 = arith.addf %8, %9 : vector<1x256xf32>
    %11 = math.sqrt %10 : vector<1x256xf32>
    %cst_8 = arith.constant 1.000000e+00 : f32
    %12 = vector.broadcast %cst_8 : f32 to vector<1x256xf32>
    %13 = arith.addf %12, %11 : vector<1x256xf32>
    %14 = math.log %13 : vector<1x256xf32>
    %c0_9 = arith.constant 0 : index
    %c0_10 = arith.constant 0 : index
    %15 = vector.load %arg10[%c0_9, %c0_10] : memref<8x256xf32, #tpu.memory_space<vmem>>, vector<1x256xf32>
    tpu.vector_store %arg10[%c0_9, %c0_10], %14 {strides = array<i32>} : memref<8x256xf32, #tpu.memory_space<vmem>>, vector<1x256xf32>,
    %16 = math.absf %11 : vector<1x256xf32>
    %cst_11 = arith.constant dense<0xFF800000> : vector<1xf32>
    %17 = vector.multi_reduction <maximumf>, %16, %cst_11 [1] : vector<1x256xf32> to vector<1xf32>
    %18 = vector.shape_cast %17 : vector<1xf32> to vector<1x1xf32>
    %cst_12 = arith.constant 9.99999997E-7 : f32
    %19 = vector.broadcast %cst_12 : f32 to vector<1x1xf32>
    %20 = arith.addf %18, %19 : vector<1x1xf32>
    %cst_13 = arith.constant 1.000000e+00 : f32
    %21 = vector.broadcast %cst_13 : f32 to vector<1x1xf32>
    %22 = arith.divf %21, %20 : vector<1x1xf32>
    %23 = vector.broadcast %22 : vector<1x1xf32> to vector<1x256xf32>
    %24 = arith.mulf %11, %23 : vector<1x256xf32>
    %c1 = arith.constant 1 : index
    %c0_14 = arith.constant 0 : index
    %25 = vector.load %arg10[%c1, %c0_14] : memref<8x256xf32, #tpu.memory_space<vmem>>, vector<1x256xf32>
    tpu.vector_store %arg10[%c1, %c0_14], %24 {strides = array<i32>} : memref<8x256xf32, #tpu.memory_space<vmem>>, vector<1x256xf32>,
    %26 = math.absf %3 : vector<1x256xf32>
    %cst_15 = arith.constant dense<0xFF800000> : vector<1xf32>
    %27 = vector.multi_reduction <maximumf>, %26, %cst_15 [1] : vector<1x256xf32> to vector<1xf32>
    %28 = vector.shape_cast %27 : vector<1xf32> to vector<1x1xf32>
    %cst_16 = arith.constant 9.99999997E-7 : f32
    %29 = vector.broadcast %cst_16 : f32 to vector<1x1xf32>
    %30 = arith.addf %28, %29 : vector<1x1xf32>
    %cst_17 = arith.constant 1.000000e+00 : f32
    %31 = vector.broadcast %cst_17 : f32 to vector<1x1xf32>
    %32 = arith.divf %31, %30 : vector<1x1xf32>
    %33 = vector.broadcast %32 : vector<1x1xf32> to vector<1x256xf32>
    %34 = arith.mulf %3, %33 : vector<1x256xf32>
    %c2 = arith.constant 2 : index
    %c0_18 = arith.constant 0 : index
    %35 = vector.load %arg10[%c2, %c0_18] : memref<8x256xf32, #tpu.memory_space<vmem>>, vector<1x256xf32>
    tpu.vector_store %arg10[%c2, %c0_18], %34 {strides = array<i32>} : memref<8x256xf32, #tpu.memory_space<vmem>>, vector<1x256xf32>,
    %36 = math.absf %5 : vector<1x256xf32>
    %cst_19 = arith.constant dense<0xFF800000> : vector<1xf32>
    %37 = vector.multi_reduction <maximumf>, %36, %cst_19 [1] : vector<1x256xf32> to vector<1xf32>
    %38 = vector.shape_cast %37 : vector<1xf32> to vector<1x1xf32>
    %cst_20 = arith.constant 9.99999997E-7 : f32
    %39 = vector.broadcast %cst_20 : f32 to vector<1x1xf32>
    %40 = arith.addf %38, %39 : vector<1x1xf32>
    %cst_21 = arith.constant 1.000000e+00 : f32
    %41 = vector.broadcast %cst_21 : f32 to vector<1x1xf32>
    %42 = arith.divf %41, %40 : vector<1x1xf32>
    %43 = vector.broadcast %42 : vector<1x1xf32> to vector<1x256xf32>
    %44 = arith.mulf %5, %43 : vector<1x256xf32>
    %c3 = arith.constant 3 : index
    %c0_22 = arith.constant 0 : index
    %45 = vector.load %arg10[%c3, %c0_22] : memref<8x256xf32, #tpu.memory_space<vmem>>, vector<1x256xf32>
    tpu.vector_store %arg10[%c3, %c0_22], %44 {strides = array<i32>} : memref<8x256xf32, #tpu.memory_space<vmem>>, vector<1x256xf32>,
    %cst_23 = arith.constant 0.000000e+00 : f32
    %46 = vector.broadcast %cst_23 : f32 to vector<4x256xf32>
    %c4 = arith.constant 4 : index
    %c0_24 = arith.constant 0 : index
    %47 = vector.load %arg10[%c4, %c0_24] : memref<8x256xf32, #tpu.memory_space<vmem>>, vector<4x256xf32>
    tpu.vector_store %arg10[%c4, %c0_24], %46 {strides = array<i32>} : memref<8x256xf32, #tpu.memory_space<vmem>>, vector<4x256xf32>,
    %c0_25 = arith.constant 0 : index
    %c0_26 = arith.constant 0 : index
    %48 = vector.load %arg10[%c0_25, %c0_26] : memref<8x256xf32, #tpu.memory_space<vmem>>, vector<8x256xf32>
    %c17_i32 = arith.constant 17 : i32
    %49 = tpu.dynamic_rotate %48 by %c17_i32 dim 1 : vector<8x256xf32>, i32 -> vector<8x256xf32>
    %c0_27 = arith.constant 0 : index
    %c0_28 = arith.constant 0 : index
    %50 = vector.load %arg4[%c0_27, %c0_28] : memref<9x256xf32, #tpu.memory_space<vmem>>, vector<1x256xf32>
    %51 = vector.broadcast %50 : vector<1x256xf32> to vector<8x256xf32>
    %52 = arith.mulf %49, %51 : vector<8x256xf32>
    %c0_29 = arith.constant 0 : index
    %c0_30 = arith.constant 0 : index
    %53 = vector.load %arg11[%c0_29, %c0_30] : memref<72x256xf32, #tpu.memory_space<vmem>>, vector<8x256xf32>
    tpu.vector_store %arg11[%c0_29, %c0_30], %52 {strides = array<i32>} : memref<72x256xf32, #tpu.memory_space<vmem>>, vector<8x256xf32>,
    %c16_i32 = arith.constant 16 : i32
    %54 = tpu.dynamic_rotate %48 by %c16_i32 dim 1 : vector<8x256xf32>, i32 -> vector<8x256xf32>
    %c1_31 = arith.constant 1 : index
    %c0_32 = arith.constant 0 : index
    %55 = vector.load %arg4[%c1_31, %c0_32] : memref<9x256xf32, #tpu.memory_space<vmem>>, vector<1x256xf32>
    %56 = vector.broadcast %55 : vector<1x256xf32> to vector<8x256xf32>
    %57 = arith.mulf %54, %56 : vector<8x256xf32>
    %c8 = arith.constant 8 : index
    %c0_33 = arith.constant 0 : index
    %58 = vector.load %arg11[%c8, %c0_33] : memref<72x256xf32, #tpu.memory_space<vmem>>, vector<8x256xf32>
    tpu.vector_store %arg11[%c8, %c0_33], %57 {strides = array<i32>} : memref<72x256xf32, #tpu.memory_space<vmem>>, vector<8x256xf32>,
    %c15_i32 = arith.constant 15 : i32
    %59 = tpu.dynamic_rotate %48 by %c15_i32 dim 1 : vector<8x256xf32>, i32 -> vector<8x256xf32>
    %c2_34 = arith.constant 2 : index
    %c0_35 = arith.constant 0 : index
    %60 = vector.load %arg4[%c2_34, %c0_35] : memref<9x256xf32, #tpu.memory_space<vmem>>, vector<1x256xf32>
    %61 = vector.broadcast %60 : vector<1x256xf32> to vector<8x256xf32>
    %62 = arith.mulf %59, %61 : vector<8x256xf32>
    %c16 = arith.constant 16 : index
    %c0_36 = arith.constant 0 : index
    %63 = vector.load %arg11[%c16, %c0_36] : memref<72x256xf32, #tpu.memory_space<vmem>>, vector<8x256xf32>
    tpu.vector_store %arg11[%c16, %c0_36], %62 {strides = array<i32>} : memref<72x256xf32, #tpu.memory_space<vmem>>, vector<8x256xf32>,
    %c1_i32 = arith.constant 1 : i32
    %64 = tpu.dynamic_rotate %48 by %c1_i32 dim 1 : vector<8x256xf32>, i32 -> vector<8x256xf32>
    %c3_37 = arith.constant 3 : index
    %c0_38 = arith.constant 0 : index
    %65 = vector.load %arg4[%c3_37, %c0_38] : memref<9x256xf32, #tpu.memory_space<vmem>>, vector<1x256xf32>
    %66 = vector.broadcast %65 : vector<1x256xf32> to vector<8x256xf32>
    %67 = arith.mulf %64, %66 : vector<8x256xf32>
    %c24 = arith.constant 24 : index
    %c0_39 = arith.constant 0 : index
    %68 = vector.load %arg11[%c24, %c0_39] : memref<72x256xf32, #tpu.memory_space<vmem>>, vector<8x256xf32>
    tpu.vector_store %arg11[%c24, %c0_39], %67 {strides = array<i32>} : memref<72x256xf32, #tpu.memory_space<vmem>>, vector<8x256xf32>,
    %c32 = arith.constant 32 : index
    %c0_40 = arith.constant 0 : index
    %69 = vector.load %arg11[%c32, %c0_40] : memref<72x256xf32, #tpu.memory_space<vmem>>, vector<8x256xf32>
    tpu.vector_store %arg11[%c32, %c0_40], %48 {strides = array<i32>} : memref<72x256xf32, #tpu.memory_space<vmem>>, vector<8x256xf32>,
    %c255_i32 = arith.constant 255 : i32
    %70 = tpu.dynamic_rotate %48 by %c255_i32 dim 1 : vector<8x256xf32>, i32 -> vector<8x256xf32>
    %c5 = arith.constant 5 : index
    %c0_41 = arith.constant 0 : index
    %71 = vector.load %arg4[%c5, %c0_41] : memref<9x256xf32, #tpu.memory_space<vmem>>, vector<1x256xf32>
    %72 = vector.broadcast %71 : vector<1x256xf32> to vector<8x256xf32>
    %73 = arith.mulf %70, %72 : vector<8x256xf32>
    %c40 = arith.constant 40 : index
    %c0_42 = arith.constant 0 : index
    %74 = vector.load %arg11[%c40, %c0_42] : memref<72x256xf32, #tpu.memory_space<vmem>>, vector<8x256xf32>
    tpu.vector_store %arg11[%c40, %c0_42], %73 {strides = array<i32>} : memref<72x256xf32, #tpu.memory_space<vmem>>, vector<8x256xf32>,
    %c241_i32 = arith.constant 241 : i32
    %75 = tpu.dynamic_rotate %48 by %c241_i32 dim 1 : vector<8x256xf32>, i32 -> vector<8x256xf32>
    %c6 = arith.constant 6 : index
    %c0_43 = arith.constant 0 : index
    %76 = vector.load %arg4[%c6, %c0_43] : memref<9x256xf32, #tpu.memory_space<vmem>>, vector<1x256xf32>
    %77 = vector.broadcast %76 : vector<1x256xf32> to vector<8x256xf32>
    %78 = arith.mulf %75, %77 : vector<8x256xf32>
    %c48 = arith.constant 48 : index
    %c0_44 = arith.constant 0 : index
    %79 = vector.load %arg11[%c48, %c0_44] : memref<72x256xf32, #tpu.memory_space<vmem>>, vector<8x256xf32>
    tpu.vector_store %arg11[%c48, %c0_44], %78 {strides = array<i32>} : memref<72x256xf32, #tpu.memory_space<vmem>>, vector<8x256xf32>,
    %c240_i32 = arith.constant 240 : i32
    %80 = tpu.dynamic_rotate %48 by %c240_i32 dim 1 : vector<8x256xf32>, i32 -> vector<8x256xf32>
    %c7 = arith.constant 7 : index
    %c0_45 = arith.constant 0 : index
    %81 = vector.load %arg4[%c7, %c0_45] : memref<9x256xf32, #tpu.memory_space<vmem>>, vector<1x256xf32>
    %82 = vector.broadcast %81 : vector<1x256xf32> to vector<8x256xf32>
    %83 = arith.mulf %80, %82 : vector<8x256xf32>
    %c56 = arith.constant 56 : index
    %c0_46 = arith.constant 0 : index
    %84 = vector.load %arg11[%c56, %c0_46] : memref<72x256xf32, #tpu.memory_space<vmem>>, vector<8x256xf32>
    tpu.vector_store %arg11[%c56, %c0_46], %83 {strides = array<i32>} : memref<72x256xf32, #tpu.memory_space<vmem>>, vector<8x256xf32>,
    %c239_i32 = arith.constant 239 : i32
    %85 = tpu.dynamic_rotate %48 by %c239_i32 dim 1 : vector<8x256xf32>, i32 -> vector<8x256xf32>
    %c8_47 = arith.constant 8 : index
    %c0_48 = arith.constant 0 : index
    %86 = vector.load %arg4[%c8_47, %c0_48] : memref<9x256xf32, #tpu.memory_space<vmem>>, vector<1x256xf32>
    %87 = vector.broadcast %86 : vector<1x256xf32> to vector<8x256xf32>
    %88 = arith.mulf %85, %87 : vector<8x256xf32>
    %c64 = arith.constant 64 : index
    %c0_49 = arith.constant 0 : index
    %89 = vector.load %arg11[%c64, %c0_49] : memref<72x256xf32, #tpu.memory_space<vmem>>, vector<8x256xf32>
    tpu.vector_store %arg11[%c64, %c0_49], %88 {strides = array<i32>} : memref<72x256xf32, #tpu.memory_space<vmem>>, vector<8x256xf32>,
    %c0_50 = arith.constant 0 : index
    %c0_51 = arith.constant 0 : index
    %c0_52 = arith.constant 0 : index
    %90 = vector.load %arg5[%c0_50, %c0_51, %c0_52] : memref<5x8x72xf32, #tpu.memory_space<vmem>>, vector<1x8x72xf32>
    %91 = vector.shape_cast %90 : vector<1x8x72xf32> to vector<8x72xf32>
    %c0_53 = arith.constant 0 : index
    %c0_54 = arith.constant 0 : index
    %92 = vector.load %arg11[%c0_53, %c0_54] : memref<72x256xf32, #tpu.memory_space<vmem>>, vector<72x256xf32>
    %cst_55 = arith.constant dense<0.000000e+00> : vector<8x256xf32>
    %93 = tpu.matmul %91, %92, %cst_55 {dimension_numbers = #tpu.dot_dimension_numbers<[1], [0], [0], [1], [0, 0, 1, 1], [], []>} : vector<8x72xf32>, vector<72x256xf32>, vector<8x256xf32> -> vector<8x256xf32>
    %c0_56 = arith.constant 0 : index
    %c0_57 = arith.constant 0 : index
    %94 = vector.load %arg6[%c0_56, %c0_57] : memref<8x5xf32, #tpu.memory_space<vmem>>, vector<8x1xf32>
    %95 = vector.broadcast %94 : vector<8x1xf32> to vector<8x256xf32>
    %96 = arith.addf %93, %95 : vector<8x256xf32>
    %cst_58 = arith.constant 0.000000e+00 : f32
    %97 = vector.broadcast %cst_58 : f32 to vector<8x256xf32>
    %98 = arith.maximumf %96, %97 : vector<8x256xf32>
    %c17_i32_59 = arith.constant 17 : i32
    %99 = tpu.dynamic_rotate %98 by %c17_i32_59 dim 1 : vector<8x256xf32>, i32 -> vector<8x256xf32>
    %c0_60 = arith.constant 0 : index
    %c0_61 = arith.constant 0 : index
    %100 = vector.load %arg4[%c0_60, %c0_61] : memref<9x256xf32, #tpu.memory_space<vmem>>, vector<1x256xf32>
    %101 = vector.broadcast %100 : vector<1x256xf32> to vector<8x256xf32>
    %102 = arith.mulf %99, %101 : vector<8x256xf32>
    %c0_62 = arith.constant 0 : index
    %c0_63 = arith.constant 0 : index
    %103 = vector.load %arg11[%c0_62, %c0_63] : memref<72x256xf32, #tpu.memory_space<vmem>>, vector<8x256xf32>
    tpu.vector_store %arg11[%c0_62, %c0_63], %102 {strides = array<i32>} : memref<72x256xf32, #tpu.memory_space<vmem>>, vector<8x256xf32>,
    %c16_i32_64 = arith.constant 16 : i32
    %104 = tpu.dynamic_rotate %98 by %c16_i32_64 dim 1 : vector<8x256xf32>, i32 -> vector<8x256xf32>
    %c1_65 = arith.constant 1 : index
    %c0_66 = arith.constant 0 : index
    %105 = vector.load %arg4[%c1_65, %c0_66] : memref<9x256xf32, #tpu.memory_space<vmem>>, vector<1x256xf32>
    %106 = vector.broadcast %105 : vector<1x256xf32> to vector<8x256xf32>
    %107 = arith.mulf %104, %106 : vector<8x256xf32>
    %c8_67 = arith.constant 8 : index
    %c0_68 = arith.constant 0 : index
    %108 = vector.load %arg11[%c8_67, %c0_68] : memref<72x256xf32, #tpu.memory_space<vmem>>, vector<8x256xf32>
    tpu.vector_store %arg11[%c8_67, %c0_68], %107 {strides = array<i32>} : memref<72x256xf32, #tpu.memory_space<vmem>>, vector<8x256xf32>,
    %c15_i32_69 = arith.constant 15 : i32
    %109 = tpu.dynamic_rotate %98 by %c15_i32_69 dim 1 : vector<8x256xf32>, i32 -> vector<8x256xf32>
    %c2_70 = arith.constant 2 : index
    %c0_71 = arith.constant 0 : index
    %110 = vector.load %arg4[%c2_70, %c0_71] : memref<9x256xf32, #tpu.memory_space<vmem>>, vector<1x256xf32>
    %111 = vector.broadcast %110 : vector<1x256xf32> to vector<8x256xf32>
    %112 = arith.mulf %109, %111 : vector<8x256xf32>
    %c16_72 = arith.constant 16 : index
    %c0_73 = arith.constant 0 : index
    %113 = vector.load %arg11[%c16_72, %c0_73] : memref<72x256xf32, #tpu.memory_space<vmem>>, vector<8x256xf32>
    tpu.vector_store %arg11[%c16_72, %c0_73], %112 {strides = array<i32>} : memref<72x256xf32, #tpu.memory_space<vmem>>, vector<8x256xf32>,
    %c1_i32_74 = arith.constant 1 : i32
    %114 = tpu.dynamic_rotate %98 by %c1_i32_74 dim 1 : vector<8x256xf32>, i32 -> vector<8x256xf32>
    %c3_75 = arith.constant 3 : index
    %c0_76 = arith.constant 0 : index
    %115 = vector.load %arg4[%c3_75, %c0_76] : memref<9x256xf32, #tpu.memory_space<vmem>>, vector<1x256xf32>
    %116 = vector.broadcast %115 : vector<1x256xf32> to vector<8x256xf32>
    %117 = arith.mulf %114, %116 : vector<8x256xf32>
    %c24_77 = arith.constant 24 : index
    %c0_78 = arith.constant 0 : index
    %118 = vector.load %arg11[%c24_77, %c0_78] : memref<72x256xf32, #tpu.memory_space<vmem>>, vector<8x256xf32>
    tpu.vector_store %arg11[%c24_77, %c0_78], %117 {strides = array<i32>} : memref<72x256xf32, #tpu.memory_space<vmem>>, vector<8x256xf32>,
    %c32_79 = arith.constant 32 : index
    %c0_80 = arith.constant 0 : index
    %119 = vector.load %arg11[%c32_79, %c0_80] : memref<72x256xf32, #tpu.memory_space<vmem>>, vector<8x256xf32>
    tpu.vector_store %arg11[%c32_79, %c0_80], %98 {strides = array<i32>} : memref<72x256xf32, #tpu.memory_space<vmem>>, vector<8x256xf32>,
    %c255_i32_81 = arith.constant 255 : i32
    %120 = tpu.dynamic_rotate %98 by %c255_i32_81 dim 1 : vector<8x256xf32>, i32 -> vector<8x256xf32>
    %c5_82 = arith.constant 5 : index
    %c0_83 = arith.constant 0 : index
    %121 = vector.load %arg4[%c5_82, %c0_83] : memref<9x256xf32, #tpu.memory_space<vmem>>, vector<1x256xf32>
    %122 = vector.broadcast %121 : vector<1x256xf32> to vector<8x256xf32>
    %123 = arith.mulf %120, %122 : vector<8x256xf32>
    %c40_84 = arith.constant 40 : index
    %c0_85 = arith.constant 0 : index
    %124 = vector.load %arg11[%c40_84, %c0_85] : memref<72x256xf32, #tpu.memory_space<vmem>>, vector<8x256xf32>
    tpu.vector_store %arg11[%c40_84, %c0_85], %123 {strides = array<i32>} : memref<72x256xf32, #tpu.memory_space<vmem>>, vector<8x256xf32>,
    %c241_i32_86 = arith.constant 241 : i32
    %125 = tpu.dynamic_rotate %98 by %c241_i32_86 dim 1 : vector<8x256xf32>, i32 -> vector<8x256xf32>
    %c6_87 = arith.constant 6 : index
    %c0_88 = arith.constant 0 : index
    %126 = vector.load %arg4[%c6_87, %c0_88] : memref<9x256xf32, #tpu.memory_space<vmem>>, vector<1x256xf32>
    %127 = vector.broadcast %126 : vector<1x256xf32> to vector<8x256xf32>
    %128 = arith.mulf %125, %127 : vector<8x256xf32>
    %c48_89 = arith.constant 48 : index
    %c0_90 = arith.constant 0 : index
    %129 = vector.load %arg11[%c48_89, %c0_90] : memref<72x256xf32, #tpu.memory_space<vmem>>, vector<8x256xf32>
    tpu.vector_store %arg11[%c48_89, %c0_90], %128 {strides = array<i32>} : memref<72x256xf32, #tpu.memory_space<vmem>>, vector<8x256xf32>,
    %c240_i32_91 = arith.constant 240 : i32
    %130 = tpu.dynamic_rotate %98 by %c240_i32_91 dim 1 : vector<8x256xf32>, i32 -> vector<8x256xf32>
    %c7_92 = arith.constant 7 : index
    %c0_93 = arith.constant 0 : index
    %131 = vector.load %arg4[%c7_92, %c0_93] : memref<9x256xf32, #tpu.memory_space<vmem>>, vector<1x256xf32>
    %132 = vector.broadcast %131 : vector<1x256xf32> to vector<8x256xf32>
    %133 = arith.mulf %130, %132 : vector<8x256xf32>
    %c56_94 = arith.constant 56 : index
    %c0_95 = arith.constant 0 : index
    %134 = vector.load %arg11[%c56_94, %c0_95] : memref<72x256xf32, #tpu.memory_space<vmem>>, vector<8x256xf32>
    tpu.vector_store %arg11[%c56_94, %c0_95], %133 {strides = array<i32>} : memref<72x256xf32, #tpu.memory_space<vmem>>, vector<8x256xf32>,
    %c239_i32_96 = arith.constant 239 : i32
    %135 = tpu.dynamic_rotate %98 by %c239_i32_96 dim 1 : vector<8x256xf32>, i32 -> vector<8x256xf32>
    %c8_97 = arith.constant 8 : index
    %c0_98 = arith.constant 0 : index
    %136 = vector.load %arg4[%c8_97, %c0_98] : memref<9x256xf32, #tpu.memory_space<vmem>>, vector<1x256xf32>
    %137 = vector.broadcast %136 : vector<1x256xf32> to vector<8x256xf32>
    %138 = arith.mulf %135, %137 : vector<8x256xf32>
    %c64_99 = arith.constant 64 : index
    %c0_100 = arith.constant 0 : index
    %139 = vector.load %arg11[%c64_99, %c0_100] : memref<72x256xf32, #tpu.memory_space<vmem>>, vector<8x256xf32>
    tpu.vector_store %arg11[%c64_99, %c0_100], %138 {strides = array<i32>} : memref<72x256xf32, #tpu.memory_space<vmem>>, vector<8x256xf32>,
    %c1_101 = arith.constant 1 : index
    %c0_102 = arith.constant 0 : index
    %c0_103 = arith.constant 0 : index
    %140 = vector.load %arg5[%c1_101, %c0_102, %c0_103] : memref<5x8x72xf32, #tpu.memory_space<vmem>>, vector<1x8x72xf32>
    %141 = vector.shape_cast %140 : vector<1x8x72xf32> to vector<8x72xf32>
    %c0_104 = arith.constant 0 : index
    %c0_105 = arith.constant 0 : index
    %142 = vector.load %arg11[%c0_104, %c0_105] : memref<72x256xf32, #tpu.memory_space<vmem>>, vector<72x256xf32>
    %cst_106 = arith.constant dense<0.000000e+00> : vector<8x256xf32>
    %143 = tpu.matmul %141, %142, %cst_106 {dimension_numbers = #tpu.dot_dimension_numbers<[1], [0], [0], [1], [0, 0, 1, 1], [], []>} : vector<8x72xf32>, vector<72x256xf32>, vector<8x256xf32> -> vector<8x256xf32>
    %c0_107 = arith.constant 0 : index
    %c1_108 = arith.constant 1 : index
    %144 = vector.load %arg6[%c0_107, %c1_108] : memref<8x5xf32, #tpu.memory_space<vmem>>, vector<8x1xf32>
    %145 = vector.broadcast %144 : vector<8x1xf32> to vector<8x256xf32>
    %146 = arith.addf %143, %145 : vector<8x256xf32>
    %cst_109 = arith.constant 0.000000e+00 : f32
    %147 = vector.broadcast %cst_109 : f32 to vector<8x256xf32>
    %148 = arith.maximumf %146, %147 : vector<8x256xf32>
    %c17_i32_110 = arith.constant 17 : i32
    %149 = tpu.dynamic_rotate %148 by %c17_i32_110 dim 1 : vector<8x256xf32>, i32 -> vector<8x256xf32>
    %c0_111 = arith.constant 0 : index
    %c0_112 = arith.constant 0 : index
    %150 = vector.load %arg4[%c0_111, %c0_112] : memref<9x256xf32, #tpu.memory_space<vmem>>, vector<1x256xf32>
    %151 = vector.broadcast %150 : vector<1x256xf32> to vector<8x256xf32>
    %152 = arith.mulf %149, %151 : vector<8x256xf32>
    %c0_113 = arith.constant 0 : index
    %c0_114 = arith.constant 0 : index
    %153 = vector.load %arg11[%c0_113, %c0_114] : memref<72x256xf32, #tpu.memory_space<vmem>>, vector<8x256xf32>
    tpu.vector_store %arg11[%c0_113, %c0_114], %152 {strides = array<i32>} : memref<72x256xf32, #tpu.memory_space<vmem>>, vector<8x256xf32>,
    %c16_i32_115 = arith.constant 16 : i32
    %154 = tpu.dynamic_rotate %148 by %c16_i32_115 dim 1 : vector<8x256xf32>, i32 -> vector<8x256xf32>
    %c1_116 = arith.constant 1 : index
    %c0_117 = arith.constant 0 : index
    %155 = vector.load %arg4[%c1_116, %c0_117] : memref<9x256xf32, #tpu.memory_space<vmem>>, vector<1x256xf32>
    %156 = vector.broadcast %155 : vector<1x256xf32> to vector<8x256xf32>
    %157 = arith.mulf %154, %156 : vector<8x256xf32>
    %c8_118 = arith.constant 8 : index
    %c0_119 = arith.constant 0 : index
    %158 = vector.load %arg11[%c8_118, %c0_119] : memref<72x256xf32, #tpu.memory_space<vmem>>, vector<8x256xf32>
    tpu.vector_store %arg11[%c8_118, %c0_119], %157 {strides = array<i32>} : memref<72x256xf32, #tpu.memory_space<vmem>>, vector<8x256xf32>,
    %c15_i32_120 = arith.constant 15 : i32
    %159 = tpu.dynamic_rotate %148 by %c15_i32_120 dim 1 : vector<8x256xf32>, i32 -> vector<8x256xf32>
    %c2_121 = arith.constant 2 : index
    %c0_122 = arith.constant 0 : index
    %160 = vector.load %arg4[%c2_121, %c0_122] : memref<9x256xf32, #tpu.memory_space<vmem>>, vector<1x256xf32>
    %161 = vector.broadcast %160 : vector<1x256xf32> to vector<8x256xf32>
    %162 = arith.mulf %159, %161 : vector<8x256xf32>
    %c16_123 = arith.constant 16 : index
    %c0_124 = arith.constant 0 : index
    %163 = vector.load %arg11[%c16_123, %c0_124] : memref<72x256xf32, #tpu.memory_space<vmem>>, vector<8x256xf32>
    tpu.vector_store %arg11[%c16_123, %c0_124], %162 {strides = array<i32>} : memref<72x256xf32, #tpu.memory_space<vmem>>, vector<8x256xf32>,
    %c1_i32_125 = arith.constant 1 : i32
    %164 = tpu.dynamic_rotate %148 by %c1_i32_125 dim 1 : vector<8x256xf32>, i32 -> vector<8x256xf32>
    %c3_126 = arith.constant 3 : index
    %c0_127 = arith.constant 0 : index
    %165 = vector.load %arg4[%c3_126, %c0_127] : memref<9x256xf32, #tpu.memory_space<vmem>>, vector<1x256xf32>
    %166 = vector.broadcast %165 : vector<1x256xf32> to vector<8x256xf32>
    %167 = arith.mulf %164, %166 : vector<8x256xf32>
    %c24_128 = arith.constant 24 : index
    %c0_129 = arith.constant 0 : index
    %168 = vector.load %arg11[%c24_128, %c0_129] : memref<72x256xf32, #tpu.memory_space<vmem>>, vector<8x256xf32>
    tpu.vector_store %arg11[%c24_128, %c0_129], %167 {strides = array<i32>} : memref<72x256xf32, #tpu.memory_space<vmem>>, vector<8x256xf32>,
    %c32_130 = arith.constant 32 : index
    %c0_131 = arith.constant 0 : index
    %169 = vector.load %arg11[%c32_130, %c0_131] : memref<72x256xf32, #tpu.memory_space<vmem>>, vector<8x256xf32>
    tpu.vector_store %arg11[%c32_130, %c0_131], %148 {strides = array<i32>} : memref<72x256xf32, #tpu.memory_space<vmem>>, vector<8x256xf32>,
    %c255_i32_132 = arith.constant 255 : i32
    %170 = tpu.dynamic_rotate %148 by %c255_i32_132 dim 1 : vector<8x256xf32>, i32 -> vector<8x256xf32>
    %c5_133 = arith.constant 5 : index
    %c0_134 = arith.constant 0 : index
    %171 = vector.load %arg4[%c5_133, %c0_134] : memref<9x256xf32, #tpu.memory_space<vmem>>, vector<1x256xf32>
    %172 = vector.broadcast %171 : vector<1x256xf32> to vector<8x256xf32>
    %173 = arith.mulf %170, %172 : vector<8x256xf32>
    %c40_135 = arith.constant 40 : index
    %c0_136 = arith.constant 0 : index
    %174 = vector.load %arg11[%c40_135, %c0_136] : memref<72x256xf32, #tpu.memory_space<vmem>>, vector<8x256xf32>
    tpu.vector_store %arg11[%c40_135, %c0_136], %173 {strides = array<i32>} : memref<72x256xf32, #tpu.memory_space<vmem>>, vector<8x256xf32>,
    %c241_i32_137 = arith.constant 241 : i32
    %175 = tpu.dynamic_rotate %148 by %c241_i32_137 dim 1 : vector<8x256xf32>, i32 -> vector<8x256xf32>
    %c6_138 = arith.constant 6 : index
    %c0_139 = arith.constant 0 : index
    %176 = vector.load %arg4[%c6_138, %c0_139] : memref<9x256xf32, #tpu.memory_space<vmem>>, vector<1x256xf32>
    %177 = vector.broadcast %176 : vector<1x256xf32> to vector<8x256xf32>
    %178 = arith.mulf %175, %177 : vector<8x256xf32>
    %c48_140 = arith.constant 48 : index
    %c0_141 = arith.constant 0 : index
    %179 = vector.load %arg11[%c48_140, %c0_141] : memref<72x256xf32, #tpu.memory_space<vmem>>, vector<8x256xf32>
    tpu.vector_store %arg11[%c48_140, %c0_141], %178 {strides = array<i32>} : memref<72x256xf32, #tpu.memory_space<vmem>>, vector<8x256xf32>,
    %c240_i32_142 = arith.constant 240 : i32
    %180 = tpu.dynamic_rotate %148 by %c240_i32_142 dim 1 : vector<8x256xf32>, i32 -> vector<8x256xf32>
    %c7_143 = arith.constant 7 : index
    %c0_144 = arith.constant 0 : index
    %181 = vector.load %arg4[%c7_143, %c0_144] : memref<9x256xf32, #tpu.memory_space<vmem>>, vector<1x256xf32>
    %182 = vector.broadcast %181 : vector<1x256xf32> to vector<8x256xf32>
    %183 = arith.mulf %180, %182 : vector<8x256xf32>
    %c56_145 = arith.constant 56 : index
    %c0_146 = arith.constant 0 : index
    %184 = vector.load %arg11[%c56_145, %c0_146] : memref<72x256xf32, #tpu.memory_space<vmem>>, vector<8x256xf32>
    tpu.vector_store %arg11[%c56_145, %c0_146], %183 {strides = array<i32>} : memref<72x256xf32, #tpu.memory_space<vmem>>, vector<8x256xf32>,
    %c239_i32_147 = arith.constant 239 : i32
    %185 = tpu.dynamic_rotate %148 by %c239_i32_147 dim 1 : vector<8x256xf32>, i32 -> vector<8x256xf32>
    %c8_148 = arith.constant 8 : index
    %c0_149 = arith.constant 0 : index
    %186 = vector.load %arg4[%c8_148, %c0_149] : memref<9x256xf32, #tpu.memory_space<vmem>>, vector<1x256xf32>
    %187 = vector.broadcast %186 : vector<1x256xf32> to vector<8x256xf32>
    %188 = arith.mulf %185, %187 : vector<8x256xf32>
    %c64_150 = arith.constant 64 : index
    %c0_151 = arith.constant 0 : index
    %189 = vector.load %arg11[%c64_150, %c0_151] : memref<72x256xf32, #tpu.memory_space<vmem>>, vector<8x256xf32>
    tpu.vector_store %arg11[%c64_150, %c0_151], %188 {strides = array<i32>} : memref<72x256xf32, #tpu.memory_space<vmem>>, vector<8x256xf32>,
    %c2_152 = arith.constant 2 : index
    %c0_153 = arith.constant 0 : index
    %c0_154 = arith.constant 0 : index
    %190 = vector.load %arg5[%c2_152, %c0_153, %c0_154] : memref<5x8x72xf32, #tpu.memory_space<vmem>>, vector<1x8x72xf32>
    %191 = vector.shape_cast %190 : vector<1x8x72xf32> to vector<8x72xf32>
    %c0_155 = arith.constant 0 : index
    %c0_156 = arith.constant 0 : index
    %192 = vector.load %arg11[%c0_155, %c0_156] : memref<72x256xf32, #tpu.memory_space<vmem>>, vector<72x256xf32>
    %cst_157 = arith.constant dense<0.000000e+00> : vector<8x256xf32>
    %193 = tpu.matmul %191, %192, %cst_157 {dimension_numbers = #tpu.dot_dimension_numbers<[1], [0], [0], [1], [0, 0, 1, 1], [], []>} : vector<8x72xf32>, vector<72x256xf32>, vector<8x256xf32> -> vector<8x256xf32>
    %c0_158 = arith.constant 0 : index
    %c2_159 = arith.constant 2 : index
    %194 = vector.load %arg6[%c0_158, %c2_159] : memref<8x5xf32, #tpu.memory_space<vmem>>, vector<8x1xf32>
    %195 = vector.broadcast %194 : vector<8x1xf32> to vector<8x256xf32>
    %196 = arith.addf %193, %195 : vector<8x256xf32>
    %197 = arith.addf %196, %98 : vector<8x256xf32>
    %cst_160 = arith.constant 0.000000e+00 : f32
    %198 = vector.broadcast %cst_160 : f32 to vector<8x256xf32>
    %199 = arith.maximumf %197, %198 : vector<8x256xf32>
    %c17_i32_161 = arith.constant 17 : i32
    %200 = tpu.dynamic_rotate %199 by %c17_i32_161 dim 1 : vector<8x256xf32>, i32 -> vector<8x256xf32>
    %c0_162 = arith.constant 0 : index
    %c0_163 = arith.constant 0 : index
    %201 = vector.load %arg4[%c0_162, %c0_163] : memref<9x256xf32, #tpu.memory_space<vmem>>, vector<1x256xf32>
    %202 = vector.broadcast %201 : vector<1x256xf32> to vector<8x256xf32>
    %203 = arith.mulf %200, %202 : vector<8x256xf32>
    %c0_164 = arith.constant 0 : index
    %c0_165 = arith.constant 0 : index
    %204 = vector.load %arg11[%c0_164, %c0_165] : memref<72x256xf32, #tpu.memory_space<vmem>>, vector<8x256xf32>
    tpu.vector_store %arg11[%c0_164, %c0_165], %203 {strides = array<i32>} : memref<72x256xf32, #tpu.memory_space<vmem>>, vector<8x256xf32>,
    %c16_i32_166 = arith.constant 16 : i32
    %205 = tpu.dynamic_rotate %199 by %c16_i32_166 dim 1 : vector<8x256xf32>, i32 -> vector<8x256xf32>
    %c1_167 = arith.constant 1 : index
    %c0_168 = arith.constant 0 : index
    %206 = vector.load %arg4[%c1_167, %c0_168] : memref<9x256xf32, #tpu.memory_space<vmem>>, vector<1x256xf32>
    %207 = vector.broadcast %206 : vector<1x256xf32> to vector<8x256xf32>
    %208 = arith.mulf %205, %207 : vector<8x256xf32>
    %c8_169 = arith.constant 8 : index
    %c0_170 = arith.constant 0 : index
    %209 = vector.load %arg11[%c8_169, %c0_170] : memref<72x256xf32, #tpu.memory_space<vmem>>, vector<8x256xf32>
    tpu.vector_store %arg11[%c8_169, %c0_170], %208 {strides = array<i32>} : memref<72x256xf32, #tpu.memory_space<vmem>>, vector<8x256xf32>,
    %c15_i32_171 = arith.constant 15 : i32
    %210 = tpu.dynamic_rotate %199 by %c15_i32_171 dim 1 : vector<8x256xf32>, i32 -> vector<8x256xf32>
    %c2_172 = arith.constant 2 : index
    %c0_173 = arith.constant 0 : index
    %211 = vector.load %arg4[%c2_172, %c0_173] : memref<9x256xf32, #tpu.memory_space<vmem>>, vector<1x256xf32>
    %212 = vector.broadcast %211 : vector<1x256xf32> to vector<8x256xf32>
    %213 = arith.mulf %210, %212 : vector<8x256xf32>
    %c16_174 = arith.constant 16 : index
    %c0_175 = arith.constant 0 : index
    %214 = vector.load %arg11[%c16_174, %c0_175] : memref<72x256xf32, #tpu.memory_space<vmem>>, vector<8x256xf32>
    tpu.vector_store %arg11[%c16_174, %c0_175], %213 {strides = array<i32>} : memref<72x256xf32, #tpu.memory_space<vmem>>, vector<8x256xf32>,
    %c1_i32_176 = arith.constant 1 : i32
    %215 = tpu.dynamic_rotate %199 by %c1_i32_176 dim 1 : vector<8x256xf32>, i32 -> vector<8x256xf32>
    %c3_177 = arith.constant 3 : index
    %c0_178 = arith.constant 0 : index
    %216 = vector.load %arg4[%c3_177, %c0_178] : memref<9x256xf32, #tpu.memory_space<vmem>>, vector<1x256xf32>
    %217 = vector.broadcast %216 : vector<1x256xf32> to vector<8x256xf32>
    %218 = arith.mulf %215, %217 : vector<8x256xf32>
    %c24_179 = arith.constant 24 : index
    %c0_180 = arith.constant 0 : index
    %219 = vector.load %arg11[%c24_179, %c0_180] : memref<72x256xf32, #tpu.memory_space<vmem>>, vector<8x256xf32>
    tpu.vector_store %arg11[%c24_179, %c0_180], %218 {strides = array<i32>} : memref<72x256xf32, #tpu.memory_space<vmem>>, vector<8x256xf32>,
    %c32_181 = arith.constant 32 : index
    %c0_182 = arith.constant 0 : index
    %220 = vector.load %arg11[%c32_181, %c0_182] : memref<72x256xf32, #tpu.memory_space<vmem>>, vector<8x256xf32>
    tpu.vector_store %arg11[%c32_181, %c0_182], %199 {strides = array<i32>} : memref<72x256xf32, #tpu.memory_space<vmem>>, vector<8x256xf32>,
    %c255_i32_183 = arith.constant 255 : i32
    %221 = tpu.dynamic_rotate %199 by %c255_i32_183 dim 1 : vector<8x256xf32>, i32 -> vector<8x256xf32>
    %c5_184 = arith.constant 5 : index
    %c0_185 = arith.constant 0 : index
    %222 = vector.load %arg4[%c5_184, %c0_185] : memref<9x256xf32, #tpu.memory_space<vmem>>, vector<1x256xf32>
    %223 = vector.broadcast %222 : vector<1x256xf32> to vector<8x256xf32>
    %224 = arith.mulf %221, %223 : vector<8x256xf32>
    %c40_186 = arith.constant 40 : index
    %c0_187 = arith.constant 0 : index
    %225 = vector.load %arg11[%c40_186, %c0_187] : memref<72x256xf32, #tpu.memory_space<vmem>>, vector<8x256xf32>
    tpu.vector_store %arg11[%c40_186, %c0_187], %224 {strides = array<i32>} : memref<72x256xf32, #tpu.memory_space<vmem>>, vector<8x256xf32>,
    %c241_i32_188 = arith.constant 241 : i32
    %226 = tpu.dynamic_rotate %199 by %c241_i32_188 dim 1 : vector<8x256xf32>, i32 -> vector<8x256xf32>
    %c6_189 = arith.constant 6 : index
    %c0_190 = arith.constant 0 : index
    %227 = vector.load %arg4[%c6_189, %c0_190] : memref<9x256xf32, #tpu.memory_space<vmem>>, vector<1x256xf32>
    %228 = vector.broadcast %227 : vector<1x256xf32> to vector<8x256xf32>
    %229 = arith.mulf %226, %228 : vector<8x256xf32>
    %c48_191 = arith.constant 48 : index
    %c0_192 = arith.constant 0 : index
    %230 = vector.load %arg11[%c48_191, %c0_192] : memref<72x256xf32, #tpu.memory_space<vmem>>, vector<8x256xf32>
    tpu.vector_store %arg11[%c48_191, %c0_192], %229 {strides = array<i32>} : memref<72x256xf32, #tpu.memory_space<vmem>>, vector<8x256xf32>,
    %c240_i32_193 = arith.constant 240 : i32
    %231 = tpu.dynamic_rotate %199 by %c240_i32_193 dim 1 : vector<8x256xf32>, i32 -> vector<8x256xf32>
    %c7_194 = arith.constant 7 : index
    %c0_195 = arith.constant 0 : index
    %232 = vector.load %arg4[%c7_194, %c0_195] : memref<9x256xf32, #tpu.memory_space<vmem>>, vector<1x256xf32>
    %233 = vector.broadcast %232 : vector<1x256xf32> to vector<8x256xf32>
    %234 = arith.mulf %231, %233 : vector<8x256xf32>
    %c56_196 = arith.constant 56 : index
    %c0_197 = arith.constant 0 : index
    %235 = vector.load %arg11[%c56_196, %c0_197] : memref<72x256xf32, #tpu.memory_space<vmem>>, vector<8x256xf32>
    tpu.vector_store %arg11[%c56_196, %c0_197], %234 {strides = array<i32>} : memref<72x256xf32, #tpu.memory_space<vmem>>, vector<8x256xf32>,
    %c239_i32_198 = arith.constant 239 : i32
    %236 = tpu.dynamic_rotate %199 by %c239_i32_198 dim 1 : vector<8x256xf32>, i32 -> vector<8x256xf32>
    %c8_199 = arith.constant 8 : index
    %c0_200 = arith.constant 0 : index
    %237 = vector.load %arg4[%c8_199, %c0_200] : memref<9x256xf32, #tpu.memory_space<vmem>>, vector<1x256xf32>
    %238 = vector.broadcast %237 : vector<1x256xf32> to vector<8x256xf32>
    %239 = arith.mulf %236, %238 : vector<8x256xf32>
    %c64_201 = arith.constant 64 : index
    %c0_202 = arith.constant 0 : index
    %240 = vector.load %arg11[%c64_201, %c0_202] : memref<72x256xf32, #tpu.memory_space<vmem>>, vector<8x256xf32>
    tpu.vector_store %arg11[%c64_201, %c0_202], %239 {strides = array<i32>} : memref<72x256xf32, #tpu.memory_space<vmem>>, vector<8x256xf32>,
    %c3_203 = arith.constant 3 : index
    %c0_204 = arith.constant 0 : index
    %c0_205 = arith.constant 0 : index
    %241 = vector.load %arg5[%c3_203, %c0_204, %c0_205] : memref<5x8x72xf32, #tpu.memory_space<vmem>>, vector<1x8x72xf32>
    %242 = vector.shape_cast %241 : vector<1x8x72xf32> to vector<8x72xf32>
    %c0_206 = arith.constant 0 : index
    %c0_207 = arith.constant 0 : index
    %243 = vector.load %arg11[%c0_206, %c0_207] : memref<72x256xf32, #tpu.memory_space<vmem>>, vector<72x256xf32>
    %cst_208 = arith.constant dense<0.000000e+00> : vector<8x256xf32>
    %244 = tpu.matmul %242, %243, %cst_208 {dimension_numbers = #tpu.dot_dimension_numbers<[1], [0], [0], [1], [0, 0, 1, 1], [], []>} : vector<8x72xf32>, vector<72x256xf32>, vector<8x256xf32> -> vector<8x256xf32>
    %c0_209 = arith.constant 0 : index
    %c3_210 = arith.constant 3 : index
    %245 = vector.load %arg6[%c0_209, %c3_210] : memref<8x5xf32, #tpu.memory_space<vmem>>, vector<8x1xf32>
    %246 = vector.broadcast %245 : vector<8x1xf32> to vector<8x256xf32>
    %247 = arith.addf %244, %246 : vector<8x256xf32>
    %cst_211 = arith.constant 0.000000e+00 : f32
    %248 = vector.broadcast %cst_211 : f32 to vector<8x256xf32>
    %249 = arith.maximumf %247, %248 : vector<8x256xf32>
    %c17_i32_212 = arith.constant 17 : i32
    %250 = tpu.dynamic_rotate %249 by %c17_i32_212 dim 1 : vector<8x256xf32>, i32 -> vector<8x256xf32>
    %c0_213 = arith.constant 0 : index
    %c0_214 = arith.constant 0 : index
    %251 = vector.load %arg4[%c0_213, %c0_214] : memref<9x256xf32, #tpu.memory_space<vmem>>, vector<1x256xf32>
    %252 = vector.broadcast %251 : vector<1x256xf32> to vector<8x256xf32>
    %253 = arith.mulf %250, %252 : vector<8x256xf32>
    %c0_215 = arith.constant 0 : index
    %c0_216 = arith.constant 0 : index
    %254 = vector.load %arg11[%c0_215, %c0_216] : memref<72x256xf32, #tpu.memory_space<vmem>>, vector<8x256xf32>
    tpu.vector_store %arg11[%c0_215, %c0_216], %253 {strides = array<i32>} : memref<72x256xf32, #tpu.memory_space<vmem>>, vector<8x256xf32>,
    %c16_i32_217 = arith.constant 16 : i32
    %255 = tpu.dynamic_rotate %249 by %c16_i32_217 dim 1 : vector<8x256xf32>, i32 -> vector<8x256xf32>
    %c1_218 = arith.constant 1 : index
    %c0_219 = arith.constant 0 : index
    %256 = vector.load %arg4[%c1_218, %c0_219] : memref<9x256xf32, #tpu.memory_space<vmem>>, vector<1x256xf32>
    %257 = vector.broadcast %256 : vector<1x256xf32> to vector<8x256xf32>
    %258 = arith.mulf %255, %257 : vector<8x256xf32>
    %c8_220 = arith.constant 8 : index
    %c0_221 = arith.constant 0 : index
    %259 = vector.load %arg11[%c8_220, %c0_221] : memref<72x256xf32, #tpu.memory_space<vmem>>, vector<8x256xf32>
    tpu.vector_store %arg11[%c8_220, %c0_221], %258 {strides = array<i32>} : memref<72x256xf32, #tpu.memory_space<vmem>>, vector<8x256xf32>,
    %c15_i32_222 = arith.constant 15 : i32
    %260 = tpu.dynamic_rotate %249 by %c15_i32_222 dim 1 : vector<8x256xf32>, i32 -> vector<8x256xf32>
    %c2_223 = arith.constant 2 : index
    %c0_224 = arith.constant 0 : index
    %261 = vector.load %arg4[%c2_223, %c0_224] : memref<9x256xf32, #tpu.memory_space<vmem>>, vector<1x256xf32>
    %262 = vector.broadcast %261 : vector<1x256xf32> to vector<8x256xf32>
    %263 = arith.mulf %260, %262 : vector<8x256xf32>
    %c16_225 = arith.constant 16 : index
    %c0_226 = arith.constant 0 : index
    %264 = vector.load %arg11[%c16_225, %c0_226] : memref<72x256xf32, #tpu.memory_space<vmem>>, vector<8x256xf32>
    tpu.vector_store %arg11[%c16_225, %c0_226], %263 {strides = array<i32>} : memref<72x256xf32, #tpu.memory_space<vmem>>, vector<8x256xf32>,
    %c1_i32_227 = arith.constant 1 : i32
    %265 = tpu.dynamic_rotate %249 by %c1_i32_227 dim 1 : vector<8x256xf32>, i32 -> vector<8x256xf32>
    %c3_228 = arith.constant 3 : index
    %c0_229 = arith.constant 0 : index
    %266 = vector.load %arg4[%c3_228, %c0_229] : memref<9x256xf32, #tpu.memory_space<vmem>>, vector<1x256xf32>
    %267 = vector.broadcast %266 : vector<1x256xf32> to vector<8x256xf32>
    %268 = arith.mulf %265, %267 : vector<8x256xf32>
    %c24_230 = arith.constant 24 : index
    %c0_231 = arith.constant 0 : index
    %269 = vector.load %arg11[%c24_230, %c0_231] : memref<72x256xf32, #tpu.memory_space<vmem>>, vector<8x256xf32>
    tpu.vector_store %arg11[%c24_230, %c0_231], %268 {strides = array<i32>} : memref<72x256xf32, #tpu.memory_space<vmem>>, vector<8x256xf32>,
    %c32_232 = arith.constant 32 : index
    %c0_233 = arith.constant 0 : index
    %270 = vector.load %arg11[%c32_232, %c0_233] : memref<72x256xf32, #tpu.memory_space<vmem>>, vector<8x256xf32>
    tpu.vector_store %arg11[%c32_232, %c0_233], %249 {strides = array<i32>} : memref<72x256xf32, #tpu.memory_space<vmem>>, vector<8x256xf32>,
    %c255_i32_234 = arith.constant 255 : i32
    %271 = tpu.dynamic_rotate %249 by %c255_i32_234 dim 1 : vector<8x256xf32>, i32 -> vector<8x256xf32>
    %c5_235 = arith.constant 5 : index
    %c0_236 = arith.constant 0 : index
    %272 = vector.load %arg4[%c5_235, %c0_236] : memref<9x256xf32, #tpu.memory_space<vmem>>, vector<1x256xf32>
    %273 = vector.broadcast %272 : vector<1x256xf32> to vector<8x256xf32>
    %274 = arith.mulf %271, %273 : vector<8x256xf32>
    %c40_237 = arith.constant 40 : index
    %c0_238 = arith.constant 0 : index
    %275 = vector.load %arg11[%c40_237, %c0_238] : memref<72x256xf32, #tpu.memory_space<vmem>>, vector<8x256xf32>
    tpu.vector_store %arg11[%c40_237, %c0_238], %274 {strides = array<i32>} : memref<72x256xf32, #tpu.memory_space<vmem>>, vector<8x256xf32>,
    %c241_i32_239 = arith.constant 241 : i32
    %276 = tpu.dynamic_rotate %249 by %c241_i32_239 dim 1 : vector<8x256xf32>, i32 -> vector<8x256xf32>
    %c6_240 = arith.constant 6 : index
    %c0_241 = arith.constant 0 : index
    %277 = vector.load %arg4[%c6_240, %c0_241] : memref<9x256xf32, #tpu.memory_space<vmem>>, vector<1x256xf32>
    %278 = vector.broadcast %277 : vector<1x256xf32> to vector<8x256xf32>
    %279 = arith.mulf %276, %278 : vector<8x256xf32>
    %c48_242 = arith.constant 48 : index
    %c0_243 = arith.constant 0 : index
    %280 = vector.load %arg11[%c48_242, %c0_243] : memref<72x256xf32, #tpu.memory_space<vmem>>, vector<8x256xf32>
    tpu.vector_store %arg11[%c48_242, %c0_243], %279 {strides = array<i32>} : memref<72x256xf32, #tpu.memory_space<vmem>>, vector<8x256xf32>,
    %c240_i32_244 = arith.constant 240 : i32
    %281 = tpu.dynamic_rotate %249 by %c240_i32_244 dim 1 : vector<8x256xf32>, i32 -> vector<8x256xf32>
    %c7_245 = arith.constant 7 : index
    %c0_246 = arith.constant 0 : index
    %282 = vector.load %arg4[%c7_245, %c0_246] : memref<9x256xf32, #tpu.memory_space<vmem>>, vector<1x256xf32>
    %283 = vector.broadcast %282 : vector<1x256xf32> to vector<8x256xf32>
    %284 = arith.mulf %281, %283 : vector<8x256xf32>
    %c56_247 = arith.constant 56 : index
    %c0_248 = arith.constant 0 : index
    %285 = vector.load %arg11[%c56_247, %c0_248] : memref<72x256xf32, #tpu.memory_space<vmem>>, vector<8x256xf32>
    tpu.vector_store %arg11[%c56_247, %c0_248], %284 {strides = array<i32>} : memref<72x256xf32, #tpu.memory_space<vmem>>, vector<8x256xf32>,
    %c239_i32_249 = arith.constant 239 : i32
    %286 = tpu.dynamic_rotate %249 by %c239_i32_249 dim 1 : vector<8x256xf32>, i32 -> vector<8x256xf32>
    %c8_250 = arith.constant 8 : index
    %c0_251 = arith.constant 0 : index
    %287 = vector.load %arg4[%c8_250, %c0_251] : memref<9x256xf32, #tpu.memory_space<vmem>>, vector<1x256xf32>
    %288 = vector.broadcast %287 : vector<1x256xf32> to vector<8x256xf32>
    %289 = arith.mulf %286, %288 : vector<8x256xf32>
    %c64_252 = arith.constant 64 : index
    %c0_253 = arith.constant 0 : index
    %290 = vector.load %arg11[%c64_252, %c0_253] : memref<72x256xf32, #tpu.memory_space<vmem>>, vector<8x256xf32>
    tpu.vector_store %arg11[%c64_252, %c0_253], %289 {strides = array<i32>} : memref<72x256xf32, #tpu.memory_space<vmem>>, vector<8x256xf32>,
    %c4_254 = arith.constant 4 : index
    %c0_255 = arith.constant 0 : index
    %c0_256 = arith.constant 0 : index
    %291 = vector.load %arg5[%c4_254, %c0_255, %c0_256] : memref<5x8x72xf32, #tpu.memory_space<vmem>>, vector<1x8x72xf32>
    %292 = vector.shape_cast %291 : vector<1x8x72xf32> to vector<8x72xf32>
    %c0_257 = arith.constant 0 : index
    %c0_258 = arith.constant 0 : index
    %293 = vector.load %arg11[%c0_257, %c0_258] : memref<72x256xf32, #tpu.memory_space<vmem>>, vector<72x256xf32>
    %cst_259 = arith.constant dense<0.000000e+00> : vector<8x256xf32>
    %294 = tpu.matmul %292, %293, %cst_259 {dimension_numbers = #tpu.dot_dimension_numbers<[1], [0], [0], [1], [0, 0, 1, 1], [], []>} : vector<8x72xf32>, vector<72x256xf32>, vector<8x256xf32> -> vector<8x256xf32>
    %c0_260 = arith.constant 0 : index
    %c4_261 = arith.constant 4 : index
    %295 = vector.load %arg6[%c0_260, %c4_261] : memref<8x5xf32, #tpu.memory_space<vmem>>, vector<8x1xf32>
    %296 = vector.broadcast %295 : vector<8x1xf32> to vector<8x256xf32>
    %297 = arith.addf %294, %296 : vector<8x256xf32>
    %298 = arith.addf %297, %199 : vector<8x256xf32>
    %cst_262 = arith.constant 0.000000e+00 : f32
    %299 = vector.broadcast %cst_262 : f32 to vector<8x256xf32>
    %300 = arith.maximumf %298, %299 : vector<8x256xf32>
    %cst_263 = arith.constant dense<0.000000e+00> : vector<8xf32>
    %301 = vector.multi_reduction <add>, %300, %cst_263 [1] : vector<8x256xf32> to vector<8xf32>
    %302 = vector.shape_cast %301 : vector<8xf32> to vector<8x1xf32>
    %cst_264 = arith.constant 2.560000e+02 : f32
    %303 = vector.broadcast %cst_264 : f32 to vector<8x1xf32>
    %304 = arith.divf %302, %303 : vector<8x1xf32>
    %c0_265 = arith.constant 0 : index
    %c0_266 = arith.constant 0 : index
    %305 = vector.load %arg7[%c0_265, %c0_266] : memref<8x1xf32, #tpu.memory_space<vmem>>, vector<8x1xf32>
    %306 = arith.mulf %304, %305 : vector<8x1xf32>
    %cst_267 = arith.constant dense<0.000000e+00> : vector<1xf32>
    %307 = vector.multi_reduction <add>, %306, %cst_267 [0] : vector<8x1xf32> to vector<1xf32>
    %308 = vector.shape_cast %307 : vector<1xf32> to vector<1x1xf32>
    %c0_268 = arith.constant 0 : index
    %c0_269 = arith.constant 0 : index
    %309 = vector.load %arg8[%c0_268, %c0_269] : memref<1x1xf32, #tpu.memory_space<vmem>>, vector<1x1xf32>
    %310 = arith.addf %308, %309 : vector<1x1xf32>
    %cst_270 = arith.constant 0.000000e+00 : f32
    %311 = vector.broadcast %cst_270 : f32 to vector<1x1xf32>
    %312 = arith.subf %311, %310 : vector<1x1xf32>
    %313 = math.exp %312 : vector<1x1xf32>
    %cst_271 = arith.constant 1.000000e+00 : f32
    %314 = vector.broadcast %cst_271 : f32 to vector<1x1xf32>
    %315 = arith.addf %314, %313 : vector<1x1xf32>
    %cst_272 = arith.constant 1.000000e+00 : f32
    %316 = vector.broadcast %cst_272 : f32 to vector<1x1xf32>
    %317 = arith.divf %316, %315 : vector<1x1xf32>
    %c0_273 = arith.constant 0 : index
    %c0_274 = arith.constant 0 : index
    %c0_275 = arith.constant 0 : index
    %318 = vector.load %arg9[%c0_273, %c0_274, %c0_275] : memref<1x1x1xf32, #tpu.memory_space<vmem>>, vector<1x1x1xf32>
    %319 = vector.shape_cast %318 : vector<1x1x1xf32> to vector<1x1xf32>
    %320 = vector.shape_cast %317 : vector<1x1xf32> to vector<1x1x1xf32>
    tpu.vector_store %arg9[%c0_273, %c0_274, %c0_275], %320 {strides = array<i32>} : memref<1x1x1xf32, #tpu.memory_space<vmem>>, vector<1x1x1xf32>,
    return
  }
  func.func @transform_0(%arg0: i32) -> (i32, i32, i32) {
    %c0_i32 = arith.constant 0 : i32
    %c0_i32_0 = arith.constant 0 : i32
    %c0_i32_1 = arith.constant 0 : i32
    return %arg0, %c0_i32, %c0_i32_0 : i32, i32, i32
  }
  func.func @transform_1(%arg0: i32) -> (i32, i32) {
    %c0_i32 = arith.constant 0 : i32
    %c0_i32_0 = arith.constant 0 : i32
    %c0_i32_1 = arith.constant 0 : i32
    return %c0_i32, %c0_i32_0 : i32, i32
  }
  func.func @transform_2(%arg0: i32) -> (i32, i32) {
    %c0_i32 = arith.constant 0 : i32
    %c0_i32_0 = arith.constant 0 : i32
    %c0_i32_1 = arith.constant 0 : i32
    return %c0_i32, %c0_i32_0 : i32, i32
  }
  func.func @transform_3(%arg0: i32) -> (i32, i32) {
    %c0_i32 = arith.constant 0 : i32
    %c0_i32_0 = arith.constant 0 : i32
    %c0_i32_1 = arith.constant 0 : i32
    return %c0_i32, %c0_i32_0 : i32, i32
  }
  func.func @transform_4(%arg0: i32) -> (i32, i32, i32) {
    %c0_i32 = arith.constant 0 : i32
    %c0_i32_0 = arith.constant 0 : i32
    %c0_i32_1 = arith.constant 0 : i32
    %c0_i32_2 = arith.constant 0 : i32
    return %c0_i32, %c0_i32_0, %c0_i32_1 : i32, i32, i32
  }
  func.func @transform_5(%arg0: i32) -> (i32, i32) {
    %c0_i32 = arith.constant 0 : i32
    %c0_i32_0 = arith.constant 0 : i32
    %c0_i32_1 = arith.constant 0 : i32
    return %c0_i32, %c0_i32_0 : i32, i32
  }
  func.func @transform_6(%arg0: i32) -> (i32, i32) {
    %c0_i32 = arith.constant 0 : i32
    %c0_i32_0 = arith.constant 0 : i32
    %c0_i32_1 = arith.constant 0 : i32
    return %c0_i32, %c0_i32_0 : i32, i32
  }
  func.func @transform_7(%arg0: i32) -> (i32, i32) {
    %c0_i32 = arith.constant 0 : i32
    %c0_i32_0 = arith.constant 0 : i32
    %c0_i32_1 = arith.constant 0 : i32
    return %c0_i32, %c0_i32_0 : i32, i32
  }
  func.func @transform_8(%arg0: i32) -> (i32, i32, i32) {
    %c0_i32 = arith.constant 0 : i32
    %c0_i32_0 = arith.constant 0 : i32
    %c0_i32_1 = arith.constant 0 : i32
    return %arg0, %c0_i32, %c0_i32_0 : i32, i32, i32
  }
}

</mosaic_0001>

<bundles_post_ra>
// kernel: ensemble_forward.1
= control target key start
LH: loop header
LB: loop body
LE: loop exit
PB: predicated region body
PF: predicated region fallthrough
CT: control target
= control target key end

     0   :  { %s3492_s0 = inlined_call_operand.vmem [shape: f32[4,1,512], index: 0, kind: input, shape index: {}]   ;;  %s3493_s1 = inlined_call_operand.hbm [shape: f32[512,256], index: 1, kind: input, shape index: {}]   ;;  %s3494_s2 = inlined_call_operand.hbm [shape: f32[512,256], index: 2, kind: input, shape index: {}]   ;;  %s3495_s3 = inlined_call_operand.hbm [shape: f32[9,256], index: 3, kind: input, shape index: {}]   ;;  %s3496_s4 = inlined_call_operand.vmem [shape: f32[5,8,72], index: 4, kind: input, shape index: {}]   ;;  %s3497_s5 = inlined_call_operand.vmem [shape: f32[8,5], index: 5, kind: input, shape index: {}]   ;;  %s3498_s6 = inlined_call_operand.vmem [shape: f32[8,1], index: 6, kind: input, shape index: {}]   ;;  %s3499_s7 = inlined_call_operand.<no memory space> [shape: f32[1,1], index: 7, kind: input, shape index: {}]   ;;  %s3500_s8 = inlined_call_operand.vmem [shape: f32[4,1,1], index: 8, kind: output, shape index: {}]  }
   0x1   :  { %v13_v0 = vstv %s3499_s7 }
   0x2   :  { %14 = vst [vmem:[#allocation4] sm:$0x1] %v13_v0 }
   0x3   :  { %15 = vsyncpa [#allocation6], 0 }
   0x4   :  { %16 = vsyncpa [#allocation8], 0  ;;  %s2851_s29 = smov 0  }
   0x5 LB: > { %s2857_s30 = sadd.s32 4294967295, %s2781_s29   ;;  %p2589_p0 = scmp.ge.s32.totalorder %s2781_s29, 1  ;;  %s2781_s29 = sphi %s2851_s29, %s22_s29  }
   0x6   : > { %p226_p1 = scmp.lt.s32.totalorder %s2781_s29, 5  ;;  %p2632_p2 = scmp.eq.s32.totalorder %s2857_s30, 0 }
   0x7   : > { %s2783_s9 = smov [#allocation7]   ;;  %s2784_s11 = smov [#allocation5]  }
   0x8   : > { %p2862_p3 = pnand %p2589_p0, %p226_p1  ;;  %s251_s10 = sshll.u32 %s2783_s9, 4  ;;  %s252_s10 = int_to_ptr.vmem [resolvable:$true] %s251_s10 }
   0x9   : > { %s238_s12 = sshll.u32 %s2784_s11, 4  ;;  %s2785_s14 = smov [#allocation9]   ;;  %s239_s12 = int_to_ptr.vmem [resolvable:$true] %s238_s12 }
   0xa   : > { %p2622_p4 = pneg %p2862_p3  ;;  %s264_s15 = sshll.u32 %s2785_s14, 4  ;;  %s2874_s15 = int_to_ptr.vmem [resolvable:$true] %s264_s15 }
   0xb   : > { %s2700_s16 = scalar_lea.vmem %s252_s10, 16384  ;;  %p2708_p10 = scmp.lt.s32.totalorder %s252_s10, %s252_s10 }
   0xc   : > { %p2870_p5 = pnand %p2632_p2, %p2622_p4  ;;  %p2701_p7 = scmp.ne.s32.totalorder %s252_s10, %s2700_s16 }
   0xd   : > { %p2709_p11 = scmp.lt.s32.totalorder %s2700_s16, %s2700_s16 }
   0xe   : > { %p2691_p6 = pneg %p2870_p5 }
   0xf   : > { %p2710_p12 = por %p2709_p11, %p2708_p10 }
  0x10   : > { %p2703_p8 = pnand %p2701_p7, %p2691_p6 }
  0x12   : > { %p2704_p9 = pneg %p2703_p8 }
  0x14   : > { %p2711_p13 = pnand %p2710_p12, %p2704_p9 }
  0x16   : > { %2714 = shalt.err (!%p2711_p13)
}
  0x17   : > { %s2786_s17 = smov 256   ;;  %s2787_s18 = smov 16  }
  0x18   : > { %2628 = dma.hbm_to_vmem [thread:$0]  (!%p2870_p5), %s3494_s2, 16384, %s252_s10, [#allocation8], %s2786_s17, %s2786_s17, %s2787_s18  }
  0x19   : > { %s2726_s21 = scalar_lea.vmem %s239_s12, 16384  ;;  %p2734_p7 = scmp.lt.s32.totalorder %s239_s12, %s239_s12 }
  0x1a   : > { %p2727_p0 = scmp.ne.s32.totalorder %s239_s12, %s2726_s21  ;;  %p2735_p8 = scmp.lt.s32.totalorder %s2726_s21, %s2726_s21 }
  0x1c   : > { %p2729_p1 = pnand %p2727_p0, %p2691_p6  ;;  %p2736_p10 = por %p2735_p8, %p2734_p7 }
  0x1e   : > { %p2730_p4 = pneg %p2729_p1 }
  0x20   : > { %p2737_p9 = pnand %p2736_p10, %p2730_p4 }
  0x22   : > { %2740 = shalt.err (!%p2737_p9)
}
  0x23   : > { %2625 = dma.hbm_to_vmem [thread:$0]  (!%p2870_p5), %s3493_s1, 16384, %s239_s12, [#allocation6], %s2786_s17, %s2786_s17, %s2787_s18  }
  0x24   : > { %s2752_s24 = scalar_lea.vmem %s2874_s15, 512  ;;  %p2760_p0 = scmp.lt.s32.totalorder %s2874_s15, %s2874_s15 }
  0x25   : > { %p2753_p11 = scmp.ne.s32.totalorder %s2874_s15, %s2752_s24  ;;  %p2761_p1 = scmp.lt.s32.totalorder %s2752_s24, %s2752_s24 }
  0x27   : > { %p2755_p12 = pnand %p2753_p11, %p2691_p6  ;;  %p2762_p4 = por %p2761_p1, %p2760_p0 }
  0x29   : > { %p2756_p13 = pneg %p2755_p12 }
  0x2b   : > { %p2763_p7 = pnand %p2762_p4, %p2756_p13 }
  0x2d   : > { %2766 = shalt.err (!%p2763_p7)
}
  0x2e   : > { %2631 = dma.hbm_to_vmem [thread:$0]  (!%p2870_p5), %s3495_s3, 512, %s2874_s15, [#allocation8], %s2786_s17, %s2786_s17, %s2787_s18  }
  0x2f   : > { %299 = sbr.rel (%p2862_p3) target bundleno = 2531 (0x9e3), region = 52 }
  0x34   : > { %2772 = dma.done.wait (%p2632_p2), [#allocation6], 16384  }
  0x35   : > { %2774 = vsyncadd (%p2632_p2), [#allocation6], 4294950912 }
  0x36   : > { %2776 = dma.done.wait (%p2632_p2), [#allocation8], 16896  }
  0x37   : > { %2778 = vsyncadd (%p2632_p2), [#allocation8], 4294950400  ;;  %v377_v1 = vld [vmem:[#allocation5 + $0xf8] sm:$0xff]  ;;  %v376_v3 = vld [vmem:[#allocation5 + $0xf0] sm:$0xff]  ;;  %p338_p2 = scmp.lt.s32.totalorder %s2857_s30, 3  ;;  %vm961_vm0 = vcmask 1040384  }
  0x38   : > { %v441_v2 = vld [vmem:[#allocation5 + $0x2f8] sm:$0xff]  ;;  %495 = vmatprep.subr.mxu0 %v377_v1  ;;  %v440_v4 = vld [vmem:[#allocation5 + $0x2f0] sm:$0xff]  ;;  %v375_v5 = vld [vmem:[#allocation5 + $0xe8] sm:$0xff]  ;;  %s2790_s10 = smov 111   ;;  %s2791_s11 = smov 113   ;;  %vm1283_vm14 = vcmask 588800  }
  0x39   : > { %566 = vmatprep.subr.mxu1 %v441_v2  ;;  %v439_v6 = vld [vmem:[#allocation5 + $0x2e8] sm:$0xff]  ;;  %496 = vmatpush1.msra.mxu0 %v376_v3  ;;  %v374_v7 = vld [vmem:[#allocation5 + $0xe0] sm:$0xff]  ;;  %v373_v9 = vld [vmem:[#allocation5 + $0xd8] sm:$0xff]  ;;  %s3506_s30 = smov (!%p338_p2, %s2857_s30), 3  ;;  %s2792_s12 = smov 112   ;;  %vm2491_vm15 = vcmask 7168  }
  0x3a   : > { %567 = vmatpush1.msra.mxu1 %v440_v4  ;;  %v438_v8 = vld [vmem:[#allocation5 + $0x2e0] sm:$0xff]  ;;  %497 = vmatprep.subr.mxu0 %v375_v5  ;;  %v437_v10 = vld [vmem:[#allocation5 + $0x2d8] sm:$0xff]  ;;  %v372_v11 = vld [vmem:[#allocation5 + $0xd0] sm:$0xff]  ;;  %s2598_s27 = sshll.u32 %s3506_s30, 2  ;;  %s2793_s13 = smov 127  }
  0x3b   : > { %568 = vmatprep.subr.mxu1 %v439_v6  ;;  %v436_v12 = vld [vmem:[#allocation5 + $0x2d0] sm:$0xff]  ;;  %498 = vmatpush1.msra.mxu0 %v374_v7  ;;  %v371_v13 = vld [vmem:[#allocation5 + $0xc8] sm:$0xff]  ;;  %v370_v15 = vld [vmem:[#allocation5 + $0xc0] sm:$0xff]  ;;  %s341_s9 = scalar_lea.vmem %s3492_s0, %s2598_s27  ;;  %s2794_s14 = smov 1  }
  0x3c   : > { %569 = vmatpush1.msra.mxu1 %v438_v8  ;;  %v435_v14 = vld [vmem:[#allocation5 + $0x2c8] sm:$0xff]  ;;  %499 = vmatprep.subr.mxu0 %v373_v9  ;;  %v434_v16 = vld [vmem:[#allocation5 + $0x2c0] sm:$0xff]  ;;  %v369_v17 = vld [vmem:[#allocation5 + $0xb8] sm:$0xff]  ;;  %s2795_s15 = smov 15   ;;  %s2796_s16 = smov 16  }
  0x3d   : > { %570 = vmatprep.subr.mxu1 %v437_v10  ;;  %500 = vmatpush1.msra.mxu0 %v372_v11  ;;  %v433_v18 = vld [vmem:[#allocation5 + $0x2b8] sm:$0xff]  ;;  %v368_v19 = vld [vmem:[#allocation5 + $0xb0] sm:$0xff]  ;;  %v367_v21 = vld [vmem:[#allocation5 + $0xa8] sm:$0xff]  ;;  %s2797_s17 = smov 17  }
  0x3e   : > { %571 = vmatpush1.msra.mxu1 %v436_v12  ;;  %501 = vmatprep.subr.mxu0 %v371_v13  ;;  %v432_v20 = vld [vmem:[#allocation5 + $0x2b0] sm:$0xff]  ;;  %v431_v22 = vld [vmem:[#allocation5 + $0x2a8] sm:$0xff]  ;;  %v366_v23 = vld [vmem:[#allocation5 + $0xa0] sm:$0xff] }
  0x3f   : > { %572 = vmatprep.subr.mxu1 %v435_v14  ;;  %502 = vmatpush1.msra.mxu0 %v370_v15  ;;  %v430_v24 = vld [vmem:[#allocation5 + $0x2a0] sm:$0xff]  ;;  %v365_v25 = vld [vmem:[#allocation5 + $0x98] sm:$0xff]  ;;  %v364_v27 = vld [vmem:[#allocation5 + $0x90] sm:$0xff] }
  0x40   : > { %573 = vmatpush1.msra.mxu1 %v434_v16  ;;  %503 = vmatprep.subr.mxu0 %v369_v17  ;;  %v429_v26 = vld [vmem:[#allocation5 + $0x298] sm:$0xff]  ;;  %v428_v28 = vld [vmem:[#allocation5 + $0x290] sm:$0xff]  ;;  %v363_v29 = vld [vmem:[#allocation5 + $0x88] sm:$0xff] }
  0x41   : > { %574 = vmatprep.subr.mxu1 %v433_v18  ;;  %504 = vmatpush1.msra.mxu0 %v368_v19  ;;  %v427_v30 = vld [vmem:[#allocation5 + $0x288] sm:$0xff]  ;;  %v362_v31 = vld [vmem:[#allocation5 + $0x80] sm:$0xff]  ;;  %v361_v33 = vld [vmem:[#allocation5 + $0x78] sm:$0xff] }
  0x42   : > { %575 = vmatpush1.msra.mxu1 %v432_v20  ;;  %505 = vmatprep.subr.mxu0 %v367_v21  ;;  %v426_v32 = vld [vmem:[#allocation5 + $0x280] sm:$0xff]  ;;  %v425_v34 = vld [vmem:[#allocation5 + $0x278] sm:$0xff]  ;;  %v360_v35 = vld [vmem:[#allocation5 + $0x70] sm:$0xff] }
  0x43   : > { %576 = vmatprep.subr.mxu1 %v431_v22  ;;  %506 = vmatpush1.msra.mxu0 %v366_v23  ;;  %v424_v36 = vld [vmem:[#allocation5 + $0x270] sm:$0xff]  ;;  %v359_v37 = vld [vmem:[#allocation5 + $0x68] sm:$0xff]  ;;  %v358_v39 = vld [vmem:[#allocation5 + $0x60] sm:$0xff] }
  0x44   : > { %577 = vmatpush1.msra.mxu1 %v430_v24  ;;  %507 = vmatprep.subr.mxu0 %v365_v25  ;;  %v423_v38 = vld [vmem:[#allocation5 + $0x268] sm:$0xff]  ;;  %v422_v40 = vld [vmem:[#allocation5 + $0x260] sm:$0xff]  ;;  %v357_v41 = vld [vmem:[#allocation5 + $0x58] sm:$0xff] }
  0x45   : > { %578 = vmatprep.subr.mxu1 %v429_v26  ;;  %508 = vmatpush1.msra.mxu0 %v364_v27  ;;  %v421_v42 = vld [vmem:[#allocation5 + $0x258] sm:$0xff]  ;;  %v356_v43 = vld [vmem:[#allocation5 + $0x50] sm:$0xff]  ;;  %v355_v45 = vld [vmem:[#allocation5 + $0x48] sm:$0xff] }
  0x46   : > { %579 = vmatpush1.msra.mxu1 %v428_v28  ;;  %509 = vmatprep.subr.mxu0 %v363_v29  ;;  %v420_v44 = vld [vmem:[#allocation5 + $0x250] sm:$0xff]  ;;  %v419_v46 = vld [vmem:[#allocation5 + $0x248] sm:$0xff]  ;;  %v354_v47 = vld [vmem:[#allocation5 + $0x40] sm:$0xff] }
  0x47   : > { %580 = vmatprep.subr.mxu1 %v427_v30  ;;  %510 = vmatpush1.msra.mxu0 %v362_v31  ;;  %v418_v48 = vld [vmem:[#allocation5 + $0x240] sm:$0xff]  ;;  %v353_v49 = vld [vmem:[#allocation5 + $0x38] sm:$0xff]  ;;  %v352_v51 = vld [vmem:[#allocation5 + $0x30] sm:$0xff] }
  0x48   : > { %581 = vmatpush1.msra.mxu1 %v426_v32  ;;  %511 = vmatprep.subr.mxu0 %v361_v33  ;;  %v417_v50 = vld [vmem:[#allocation5 + $0x238] sm:$0xff]  ;;  %v416_v52 = vld [vmem:[#allocation5 + $0x230] sm:$0xff]  ;;  %v351_v53 = vld [vmem:[#allocation5 + $0x28] sm:$0xff] }
  0x49   : > { %582 = vmatprep.subr.mxu1 %v425_v34  ;;  %512 = vmatpush1.msra.mxu0 %v360_v35  ;;  %v415_v54 = vld [vmem:[#allocation5 + $0x228] sm:$0xff]  ;;  %v350_v55 = vld [vmem:[#allocation5 + $0x20] sm:$0xff]  ;;  %v349_v57 = vld [vmem:[#allocation5 + $0x18] sm:$0xff] }
  0x4a   : > { %583 = vmatpush1.msra.mxu1 %v424_v36  ;;  %513 = vmatprep.subr.mxu0 %v359_v37  ;;  %v414_v56 = vld [vmem:[#allocation5 + $0x220] sm:$0xff]  ;;  %v413_v58 = vld [vmem:[#allocation5 + $0x218] sm:$0xff]  ;;  %v348_v59 = vld [vmem:[#allocation5 + $0x10] sm:$0xff] }
  0x4b   : > { %584 = vmatprep.subr.mxu1 %v423_v38  ;;  %514 = vmatpush1.msra.mxu0 %v358_v39  ;;  %v412_v60 = vld [vmem:[#allocation5 + $0x210] sm:$0xff]  ;;  %v347_v61 = vld [vmem:[#allocation5 + $0x8] sm:$0xff]  ;;  %v346_v63 = vld [vmem:[#allocation5] sm:$0xff]  ;;  %v475_v39 = vlaneseq }
  0x4c   : > { %585 = vmatpush1.msra.mxu1 %v422_v40  ;;  %515 = vmatprep.subr.mxu0 %v357_v41  ;;  %v411_v62 = vld [vmem:[#allocation5 + $0x208] sm:$0xff]  ;;  %v410_v0 = vld [vmem:[#allocation5 + $0x200] sm:$0xff]  ;;  %v409_v1 = vld [vmem:[#allocation5 + $0x1f8] sm:$0xff] }
  0x4d   : > { %586 = vmatprep.subr.mxu1 %v421_v42  ;;  %516 = vmatpush1.msra.mxu0 %v356_v43  ;;  %v473_v2 = vld [vmem:[#allocation5 + $0x3f8] sm:$0xff]  ;;  %v408_v3 = vld [vmem:[#allocation5 + $0x1f0] sm:$0xff]  ;;  %v407_v5 = vld [vmem:[#allocation5 + $0x1e8] sm:$0xff]  ;;  %vm2984_vm5 = vcmp.lt.s32.totalorder %v475_v39, 256 }
  0x4e   : > { %587 = vmatpush1.msra.mxu1 %v420_v44  ;;  %517 = vmatprep.subr.mxu0 %v355_v45  ;;  %v472_v4 = vld [vmem:[#allocation5 + $0x3f0] sm:$0xff]  ;;  %v471_v6 = vld [vmem:[#allocation5 + $0x3e8] sm:$0xff]  ;;  %v406_v7 = vld [vmem:[#allocation5 + $0x1e0] sm:$0xff] }
  0x4f   : > { %588 = vmatprep.subr.mxu1 %v419_v46  ;;  %518 = vmatpush1.msra.mxu0 %v354_v47  ;;  %v470_v8 = vld [vmem:[#allocation5 + $0x3e0] sm:$0xff]  ;;  %v405_v9 = vld [vmem:[#allocation5 + $0x1d8] sm:$0xff]  ;;  %v404_v11 = vld [vmem:[#allocation5 + $0x1d0] sm:$0xff] }
  0x50   : > { %589 = vmatpush1.msra.mxu1 %v418_v48  ;;  %519 = vmatprep.subr.mxu0 %v353_v49  ;;  %v469_v10 = vld [vmem:[#allocation5 + $0x3d8] sm:$0xff]  ;;  %v468_v12 = vld [vmem:[#allocation5 + $0x3d0] sm:$0xff]  ;;  %v403_v13 = vld [vmem:[#allocation5 + $0x1c8] sm:$0xff]  ;;  %v2925_v48 = vshrl.u32 %v475_v39, 7 }
  0x51   : > { %590 = vmatprep.subr.mxu1 %v417_v50  ;;  %520 = vmatpush1.msra.mxu0 %v352_v51  ;;  %v467_v14 = vld [vmem:[#allocation5 + $0x3c8] sm:$0xff]  ;;  %v402_v15 = vld [vmem:[#allocation5 + $0x1c0] sm:$0xff]  ;;  %v401_v17 = vld [vmem:[#allocation5 + $0x1b8] sm:$0xff] }
  0x52   : > { %591 = vmatpush1.msra.mxu1 %v416_v52  ;;  %521 = vmatprep.subr.mxu0 %v351_v53  ;;  %v466_v16 = vld [vmem:[#allocation5 + $0x3c0] sm:$0xff]  ;;  %v465_v18 = vld [vmem:[#allocation5 + $0x3b8] sm:$0xff]  ;;  %v400_v19 = vld [vmem:[#allocation5 + $0x1b0] sm:$0xff] }
  0x53   : > { %592 = vmatprep.subr.mxu1 %v415_v54  ;;  %522 = vmatpush1.msra.mxu0 %v350_v55  ;;  %v464_v20 = vld [vmem:[#allocation5 + $0x3b0] sm:$0xff]  ;;  %v399_v21 = vld [vmem:[#allocation5 + $0x1a8] sm:$0xff]  ;;  %v398_v23 = vld [vmem:[#allocation5 + $0x1a0] sm:$0xff] }
  0x54   : > { %593 = vmatpush1.msra.mxu1 %v414_v56  ;;  %523 = vmatprep.subr.mxu0 %v349_v57  ;;  %v463_v22 = vld [vmem:[#allocation5 + $0x3a8] sm:$0xff]  ;;  %v462_v24 = vld [vmem:[#allocation5 + $0x3a0] sm:$0xff]  ;;  %v397_v25 = vld [vmem:[#allocation5 + $0x198] sm:$0xff]  ;;  %v2931_v57 = vsub.s32 1, %v2925_v48 }
  0x55   : > { %594 = vmatprep.subr.mxu1 %v413_v58  ;;  %524 = vmatpush1.msra.mxu0 %v348_v59  ;;  %v461_v26 = vld [vmem:[#allocation5 + $0x398] sm:$0xff]  ;;  %v396_v27 = vld [vmem:[#allocation5 + $0x190] sm:$0xff]  ;;  %v395_v29 = vld [vmem:[#allocation5 + $0x188] sm:$0xff] }
  0x56   : > { %595 = vmatpush1.msra.mxu1 %v412_v60  ;;  %525 = vmatprep.subr.mxu0 %v347_v61  ;;  %v460_v28 = vld [vmem:[#allocation5 + $0x390] sm:$0xff]  ;;  %v459_v30 = vld [vmem:[#allocation5 + $0x388] sm:$0xff]  ;;  %v394_v31 = vld [vmem:[#allocation5 + $0x180] sm:$0xff]  ;;  %v489_v61 = vsub.s32 3, %v2925_v48 }
  0x57   : > { %596 = vmatprep.subr.mxu1 %v411_v62  ;;  %526 = vmatpush1.msra.mxu0 %v346_v63  ;;  %v458_v32 = vld [vmem:[#allocation5 + $0x380] sm:$0xff]  ;;  %v393_v33 = vld [vmem:[#allocation5 + $0x178] sm:$0xff]  ;;  %v392_v35 = vld [vmem:[#allocation5 + $0x170] sm:$0xff] }
  0x58   : > { %597 = vmatpush1.msra.mxu1 %v410_v0  ;;  %527 = vmatprep.subr.mxu0 %v409_v1  ;;  %v457_v34 = vld [vmem:[#allocation5 + $0x378] sm:$0xff]  ;;  %v456_v36 = vld [vmem:[#allocation5 + $0x370] sm:$0xff]  ;;  %v391_v37 = vld [vmem:[#allocation5 + $0x168] sm:$0xff]  ;;  %v2935_v0 = vsub.s32 0, %v2925_v48  ;;  %v485_v1 = vsub.s32 2, %v2925_v48 }
  0x59   : > { %598 = vmatprep.subr.mxu1 %v473_v2  ;;  %528 = vmatpush2.msra.mxu0 %v408_v3  ;;  %v455_v38 = vld [vmem:[#allocation5 + $0x368] sm:$0xff]  ;;  %v390_v40 = vld [vmem:[#allocation5 + $0x160] sm:$0xff]  ;;  %v389_v42 = vld [vmem:[#allocation5 + $0x158] sm:$0xff] }
  0x5a   : > { %599 = vmatpush2.msra.mxu1 %v472_v4  ;;  %529 = vmatprep.subr.mxu0 %v407_v5  ;;  %v454_v41 = vld [vmem:[#allocation5 + $0x360] sm:$0xff]  ;;  %v453_v43 = vld [vmem:[#allocation5 + $0x358] sm:$0xff]  ;;  %v388_v44 = vld [vmem:[#allocation5 + $0x150] sm:$0xff] }
  0x5b   : > { %600 = vmatprep.subr.mxu1 %v471_v6  ;;  %530 = vmatpush2.msra.mxu0 %v406_v7  ;;  %v452_v45 = vld [vmem:[#allocation5 + $0x350] sm:$0xff]  ;;  %v387_v46 = vld [vmem:[#allocation5 + $0x148] sm:$0xff]  ;;  %v386_v49 = vld [vmem:[#allocation5 + $0x140] sm:$0xff] }
  0x5c   : > { %601 = vmatpush2.msra.mxu1 %v470_v8  ;;  %531 = vmatprep.subr.mxu0 %v405_v9  ;;  %v451_v47 = vld [vmem:[#allocation5 + $0x348] sm:$0xff]  ;;  %v450_v50 = vld [vmem:[#allocation5 + $0x340] sm:$0xff]  ;;  %v385_v51 = vld [vmem:[#allocation5 + $0x138] sm:$0xff] }
  0x5d   : > { %602 = vmatprep.subr.mxu1 %v469_v10  ;;  %532 = vmatpush2.msra.mxu0 %v404_v11  ;;  %v449_v52 = vld [vmem:[#allocation5 + $0x338] sm:$0xff]  ;;  %v384_v53 = vld [vmem:[#allocation5 + $0x130] sm:$0xff]  ;;  %v383_v55 = vld [vmem:[#allocation5 + $0x128] sm:$0xff] }
  0x5e   : > { %603 = vmatpush2.msra.mxu1 %v468_v12  ;;  %533 = vmatprep.subr.mxu0 %v403_v13  ;;  %v448_v54 = vld [vmem:[#allocation5 + $0x330] sm:$0xff]  ;;  %v447_v56 = vld [vmem:[#allocation5 + $0x328] sm:$0xff]  ;;  %v382_v58 = vld [vmem:[#allocation5 + $0x120] sm:$0xff] }
  0x5f   : > { %604 = vmatprep.subr.mxu1 %v467_v14  ;;  %534 = vmatpush2.msra.mxu0 %v402_v15  ;;  %v446_v59 = vld [vmem:[#allocation5 + $0x320] sm:$0xff]  ;;  %v345_v60 = vld [vmem:[%s341_s9] sm:$0xf]  ;;  %v381_v62 = vld [vmem:[#allocation5 + $0x118] sm:$0xff] }
  0x60   : > { %605 = vmatpush2.msra.mxu1 %v466_v16  ;;  %535 = vmatprep.subr.mxu0 %v401_v17  ;;  %v445_v63 = vld [vmem:[#allocation5 + $0x318] sm:$0xff]  ;;  %v380_v2 = vld [vmem:[#allocation5 + $0x110] sm:$0xff]  ;;  %v379_v4 = vld [vmem:[#allocation5 + $0x108] sm:$0xff]  ;;  %v2939_v6 = vrot.slane %v345_v60, %v2931_v57  ;;  %v2941_v8 = vrot.slane %v345_v60, %v489_v61  ;;  %v2944_v10 = vrot.slane %v345_v60, %v2935_v0 }
  0x61   : > { %606 = vmatprep.subr.mxu1 %v465_v18  ;;  %536 = vmatpush2.msra.mxu0 %v400_v19  ;;  %v444_v3 = vld [vmem:[#allocation5 + $0x310] sm:$0xff]  ;;  %v443_v5 = vld [vmem:[#allocation5 + $0x308] sm:$0xff]  ;;  %v378_v7 = vld [vmem:[#allocation5 + $0x100] sm:$0xff]  ;;  %v2946_v11 = vrot.slane %v345_v60, %v485_v1 }
  0x62   : > { %607 = vmatpush2.msra.mxu1 %v464_v20  ;;  %537 = vmatprep.subr.mxu0 %v399_v21  ;;  %v442_v9 = vld [vmem:[#allocation5 + $0x300] sm:$0xff]  ;;  %v668_v12 = vld [vmem:[#allocation7 + $0xf8] sm:$0xff]  ;;  %v667_v14 = vld [vmem:[#allocation7 + $0xf0] sm:$0xff] }
  0x63   : > { %608 = vmatprep.subr.mxu1 %v463_v22  ;;  %538 = vmatpush2.msra.mxu0 %v398_v23  ;;  %v732_v13 = vld [vmem:[#allocation7 + $0x2f8] sm:$0xff]  ;;  %v731_v15 = vld [vmem:[#allocation7 + $0x2f0] sm:$0xff]  ;;  %v666_v16 = vld [vmem:[#allocation7 + $0xe8] sm:$0xff] }
  0x64   : > { %609 = vmatpush2.msra.mxu1 %v462_v24  ;;  %539 = vmatprep.subr.mxu0 %v397_v25  ;;  %v730_v17 = vld [vmem:[#allocation7 + $0x2e8] sm:$0xff]  ;;  %v665_v18 = vld [vmem:[#allocation7 + $0xe0] sm:$0xff]  ;;  %v664_v20 = vld [vmem:[#allocation7 + $0xd8] sm:$0xff] }
  0x65   : > { %610 = vmatprep.subr.mxu1 %v461_v26  ;;  %540 = vmatpush2.msra.mxu0 %v396_v27  ;;  %v729_v19 = vld [vmem:[#allocation7 + $0x2e0] sm:$0xff]  ;;  %v728_v21 = vld [vmem:[#allocation7 + $0x2d8] sm:$0xff]  ;;  %v663_v22 = vld [vmem:[#allocation7 + $0xd0] sm:$0xff] }
  0x66   : > { %611 = vmatpush2.msra.mxu1 %v460_v28  ;;  %541 = vmatprep.subr.mxu0 %v395_v29  ;;  %v727_v23 = vld [vmem:[#allocation7 + $0x2d0] sm:$0xff]  ;;  %v662_v24 = vld [vmem:[#allocation7 + $0xc8] sm:$0xff]  ;;  %v661_v26 = vld [vmem:[#allocation7 + $0xc0] sm:$0xff] }
  0x67   : > { %612 = vmatprep.subr.mxu1 %v459_v30  ;;  %542 = vmatpush2.msra.mxu0 %v394_v31  ;;  %v726_v25 = vld [vmem:[#allocation7 + $0x2c8] sm:$0xff]  ;;  %v725_v27 = vld [vmem:[#allocation7 + $0x2c0] sm:$0xff]  ;;  %v660_v28 = vld [vmem:[#allocation7 + $0xb8] sm:$0xff] }
  0x68   : > { %613 = vmatpush2.msra.mxu1 %v458_v32  ;;  %543 = vmatprep.subr.mxu0 %v393_v33  ;;  %v724_v29 = vld [vmem:[#allocation7 + $0x2b8] sm:$0xff]  ;;  %v659_v30 = vld [vmem:[#allocation7 + $0xb0] sm:$0xff]  ;;  %v658_v32 = vld [vmem:[#allocation7 + $0xa8] sm:$0xff] }
  0x69   : > { %614 = vmatprep.subr.mxu1 %v457_v34  ;;  %544 = vmatpush2.msra.mxu0 %v392_v35  ;;  %v723_v31 = vld [vmem:[#allocation7 + $0x2b0] sm:$0xff]  ;;  %v722_v33 = vld [vmem:[#allocation7 + $0x2a8] sm:$0xff]  ;;  %v657_v34 = vld [vmem:[#allocation7 + $0xa0] sm:$0xff] }
  0x6a   : > { %615 = vmatpush2.msra.mxu1 %v456_v36  ;;  %545 = vmatprep.subr.mxu0 %v391_v37  ;;  %v721_v35 = vld [vmem:[#allocation7 + $0x2a0] sm:$0xff]  ;;  %v656_v36 = vld [vmem:[#allocation7 + $0x98] sm:$0xff]  ;;  %v710_v60 = vld [vmem:[#allocation7 + $0x248] sm:$0xff] }
  0x6b   : > { %616 = vmatprep.subr.mxu1 %v455_v38  ;;  %546 = vmatpush2.msra.mxu0 %v390_v40  ;;  %v720_v37 = vld [vmem:[#allocation7 + $0x298] sm:$0xff]  ;;  %v655_v38 = vld [vmem:[#allocation7 + $0x90] sm:$0xff]  ;;  %v645_v61 = vld [vmem:[#allocation7 + $0x40] sm:$0xff] }
  0x6c   : > { %617 = vmatpush2.msra.mxu1 %v454_v41  ;;  %547 = vmatprep.subr.mxu0 %v389_v42  ;;  %v719_v40 = vld [vmem:[#allocation7 + $0x290] sm:$0xff]  ;;  %v654_v41 = vld [vmem:[#allocation7 + $0x88] sm:$0xff]  ;;  %v708_v1 = vld [vmem:[#allocation7 + $0x238] sm:$0xff] }
  0x6d   : > { %618 = vmatprep.subr.mxu1 %v453_v43  ;;  %548 = vmatpush2.msra.mxu0 %v388_v44  ;;  %v718_v42 = vld [vmem:[#allocation7 + $0x288] sm:$0xff]  ;;  %v653_v43 = vld [vmem:[#allocation7 + $0x80] sm:$0xff] }
  0x6e   : > { %619 = vmatpush2.msra.mxu1 %v452_v45  ;;  %549 = vmatprep.subr.mxu0 %v387_v46  ;;  %v717_v44 = vld [vmem:[#allocation7 + $0x280] sm:$0xff]  ;;  %v652_v45 = vld [vmem:[#allocation7 + $0x78] sm:$0xff] }
  0x6f   : > { %620 = vmatprep.subr.mxu1 %v451_v47  ;;  %550 = vmatpush2.msra.mxu0 %v386_v49  ;;  %v716_v46 = vld [vmem:[#allocation7 + $0x278] sm:$0xff]  ;;  %v651_v47 = vld [vmem:[#allocation7 + $0x70] sm:$0xff] }
  0x70   : > { %621 = vmatpush2.msra.mxu1 %v450_v50  ;;  %551 = vmatprep.subr.mxu0 %v385_v51  ;;  %v715_v49 = vld [vmem:[#allocation7 + $0x270] sm:$0xff]  ;;  %v650_v50 = vld [vmem:[#allocation7 + $0x68] sm:$0xff] }
  0x71   : > { %622 = vmatprep.subr.mxu1 %v449_v52  ;;  %552 = vmatpush2.msra.mxu0 %v384_v53  ;;  %v714_v51 = vld [vmem:[#allocation7 + $0x268] sm:$0xff]  ;;  %v649_v52 = vld [vmem:[#allocation7 + $0x60] sm:$0xff] }
  0x72   : > { %623 = vmatpush2.msra.mxu1 %v448_v54  ;;  %553 = vmatprep.subr.mxu0 %v383_v55  ;;  %v713_v53 = vld [vmem:[#allocation7 + $0x260] sm:$0xff]  ;;  %v648_v54 = vld [vmem:[#allocation7 + $0x58] sm:$0xff] }
  0x73   : > { %624 = vmatprep.subr.mxu1 %v447_v56  ;;  %554 = vmatpush2.msra.mxu0 %v382_v58  ;;  %v712_v55 = vld [vmem:[#allocation7 + $0x258] sm:$0xff]  ;;  %v647_v56 = vld [vmem:[#allocation7 + $0x50] sm:$0xff] }
  0x74   : > { %625 = vmatpush2.msra.mxu1 %v446_v59  ;;  %555 = vmatprep.subr.mxu0 %v381_v62  ;;  %v711_v58 = vld [vmem:[#allocation7 + $0x250] sm:$0xff]  ;;  %v646_v59 = vld [vmem:[#allocation7 + $0x48] sm:$0xff]  ;;  %v709_v62 = vld [vmem:[#allocation7 + $0x240] sm:$0xff] }
  0x75   : > { %626 = vmatprep.subr.mxu1 %v445_v63  ;;  %556 = vmatpush2.msra.mxu0 %v380_v2  ;;  %v644_v63 = vld [vmem:[#allocation7 + $0x38] sm:$0xff]  ;;  %v643_v2 = vld [vmem:[#allocation7 + $0x30] sm:$0xff] }
  0x76   : > { %627 = vmatpush2.msra.mxu1 %v444_v3  ;;  %557 = vmatprep.subr.mxu0 %v379_v4  ;;  %v707_v3 = vld [vmem:[#allocation7 + $0x230] sm:$0xff]  ;;  %v642_v4 = vld [vmem:[#allocation7 + $0x28] sm:$0xff] }
  0x77   : > { %628 = vmatprep.subr.mxu1 %v443_v5  ;;  %558 = vmatpush2.msra.mxu0 %v378_v7  ;;  %v706_v5 = vld [vmem:[#allocation7 + $0x228] sm:$0xff]  ;;  %v641_v7 = vld [vmem:[#allocation7 + $0x20] sm:$0xff] }
  0x78   : > { %559 = vmatprep.mubr.f32.mxu0 %v2939_v6  ;;  %629 = vmatpush2.msra.mxu1 %v442_v9  ;;  %v705_v9 = vld [vmem:[#allocation7 + $0x220] sm:$0xff] }
  0x79   : > { %630 = vmatprep.mubr.f32.mxu1 %v2941_v8  ;;  %560 = vmatmul.mubr.f32.vlgmr.msra.gmra.mxu0 %v2944_v10 }
  0x7a   : > { %631 = vmatmul.mubr.f32.vlgmr.msra.gmra.mxu1 %v2946_v11  ;;  %765 = vmatprep.subr.mxu0 %v668_v12  ;;  %v640_v12 = vld [vmem:[#allocation7 + $0x18] sm:$0xff] }
  0x7b   : > { %836 = vmatprep.subr.mxu1 %v732_v13  ;;  %766 = vmatpush1.msra.mxu0 %v667_v14  ;;  %v704_v13 = vld [vmem:[#allocation7 + $0x218] sm:$0xff]  ;;  %v639_v14 = vld [vmem:[#allocation7 + $0x10] sm:$0xff] }
  0x7c   : > { %837 = vmatpush1.msra.mxu1 %v731_v15  ;;  %767 = vmatprep.subr.mxu0 %v666_v16  ;;  %v703_v15 = vld [vmem:[#allocation7 + $0x210] sm:$0xff]  ;;  %v638_v16 = vld [vmem:[#allocation7 + $0x8] sm:$0xff] }
  0x7d   : > { %838 = vmatprep.subr.mxu1 %v730_v17  ;;  %768 = vmatpush1.msra.mxu0 %v665_v18  ;;  %v702_v17 = vld [vmem:[#allocation7 + $0x208] sm:$0xff]  ;;  %v637_v18 = vld [vmem:[#allocation7] sm:$0xff] }
  0x7e   : > { %839 = vmatpush1.msra.mxu1 %v729_v19  ;;  %769 = vmatprep.subr.mxu0 %v664_v20  ;;  %v701_v19 = vld [vmem:[#allocation7 + $0x200] sm:$0xff]  ;;  %v700_v20 = vld [vmem:[#allocation7 + $0x1f8] sm:$0xff] }
  0x7f   : > { %840 = vmatprep.subr.mxu1 %v728_v21  ;;  %770 = vmatpush1.msra.mxu0 %v663_v22  ;;  %v764_v21 = vld [vmem:[#allocation7 + $0x3f8] sm:$0xff]  ;;  %v699_v22 = vld [vmem:[#allocation7 + $0x1f0] sm:$0xff] }
  0x80   : > { %841 = vmatpush1.msra.mxu1 %v727_v23  ;;  %771 = vmatprep.subr.mxu0 %v662_v24  ;;  %v763_v23 = vld [vmem:[#allocation7 + $0x3f0] sm:$0xff]  ;;  %v698_v24 = vld [vmem:[#allocation7 + $0x1e8] sm:$0xff] }
  0x81   : > { %842 = vmatprep.subr.mxu1 %v726_v25  ;;  %772 = vmatpush1.msra.mxu0 %v661_v26  ;;  %v762_v25 = vld [vmem:[#allocation7 + $0x3e8] sm:$0xff]  ;;  %v697_v26 = vld [vmem:[#allocation7 + $0x1e0] sm:$0xff] }
  0x82   : > { %843 = vmatpush1.msra.mxu1 %v725_v27  ;;  %773 = vmatprep.subr.mxu0 %v660_v28  ;;  %v761_v27 = vld [vmem:[#allocation7 + $0x3e0] sm:$0xff]  ;;  %v696_v28 = vld [vmem:[#allocation7 + $0x1d8] sm:$0xff] }
  0x83   : > { %844 = vmatprep.subr.mxu1 %v724_v29  ;;  %774 = vmatpush1.msra.mxu0 %v659_v30  ;;  %v760_v29 = vld [vmem:[#allocation7 + $0x3d8] sm:$0xff]  ;;  %v695_v30 = vld [vmem:[#allocation7 + $0x1d0] sm:$0xff] }
  0x84   : > { %845 = vmatpush1.msra.mxu1 %v723_v31  ;;  %775 = vmatprep.subr.mxu0 %v658_v32  ;;  %v759_v31 = vld [vmem:[#allocation7 + $0x3d0] sm:$0xff]  ;;  %v694_v32 = vld [vmem:[#allocation7 + $0x1c8] sm:$0xff] }
  0x85   : > { %846 = vmatprep.subr.mxu1 %v722_v33  ;;  %776 = vmatpush1.msra.mxu0 %v657_v34  ;;  %v758_v33 = vld [vmem:[#allocation7 + $0x3c8] sm:$0xff]  ;;  %v693_v34 = vld [vmem:[#allocation7 + $0x1c0] sm:$0xff] }
  0x86   : > { %847 = vmatpush1.msra.mxu1 %v721_v35  ;;  %777 = vmatprep.subr.mxu0 %v656_v36  ;;  %v757_v35 = vld [vmem:[#allocation7 + $0x3c0] sm:$0xff]  ;;  %v692_v36 = vld [vmem:[#allocation7 + $0x1b8] sm:$0xff] }
  0x87   : > { %848 = vmatprep.subr.mxu1 %v720_v37  ;;  %778 = vmatpush1.msra.mxu0 %v655_v38  ;;  %v756_v37 = vld [vmem:[#allocation7 + $0x3b8] sm:$0xff]  ;;  %v691_v38 = vld [vmem:[#allocation7 + $0x1b0] sm:$0xff] }
  0x88   : > { %849 = vmatpush1.msra.mxu1 %v719_v40  ;;  %779 = vmatprep.subr.mxu0 %v654_v41  ;;  %v755_v40 = vld [vmem:[#allocation7 + $0x3b0] sm:$0xff]  ;;  %v690_v41 = vld [vmem:[#allocation7 + $0x1a8] sm:$0xff] }
  0x89   : > { %850 = vmatprep.subr.mxu1 %v718_v42  ;;  %780 = vmatpush1.msra.mxu0 %v653_v43  ;;  %v754_v42 = vld [vmem:[#allocation7 + $0x3a8] sm:$0xff]  ;;  %v689_v43 = vld [vmem:[#allocation7 + $0x1a0] sm:$0xff] }
  0x8a   : > { %851 = vmatpush1.msra.mxu1 %v717_v44  ;;  %781 = vmatprep.subr.mxu0 %v652_v45  ;;  %v753_v44 = vld [vmem:[#allocation7 + $0x3a0] sm:$0xff]  ;;  %v688_v45 = vld [vmem:[#allocation7 + $0x198] sm:$0xff] }
  0x8b   : > { %852 = vmatprep.subr.mxu1 %v716_v46  ;;  %782 = vmatpush1.msra.mxu0 %v651_v47  ;;  %v752_v46 = vld [vmem:[#allocation7 + $0x398] sm:$0xff]  ;;  %v687_v47 = vld [vmem:[#allocation7 + $0x190] sm:$0xff] }
  0x8c   : > { %853 = vmatpush1.msra.mxu1 %v715_v49  ;;  %783 = vmatprep.subr.mxu0 %v650_v50  ;;  %v751_v49 = vld [vmem:[#allocation7 + $0x390] sm:$0xff]  ;;  %v686_v50 = vld [vmem:[#allocation7 + $0x188] sm:$0xff] }
  0x8d   : > { %854 = vmatprep.subr.mxu1 %v714_v51  ;;  %784 = vmatpush1.msra.mxu0 %v649_v52  ;;  %v750_v51 = vld [vmem:[#allocation7 + $0x388] sm:$0xff]  ;;  %v685_v52 = vld [vmem:[#allocation7 + $0x180] sm:$0xff] }
  0x8e   : > { %855 = vmatpush1.msra.mxu1 %v713_v53  ;;  %785 = vmatprep.subr.mxu0 %v648_v54  ;;  %v749_v53 = vld [vmem:[#allocation7 + $0x380] sm:$0xff]  ;;  %v684_v54 = vld [vmem:[#allocation7 + $0x178] sm:$0xff] }
  0x8f   : > { %856 = vmatprep.subr.mxu1 %v712_v55  ;;  %786 = vmatpush1.msra.mxu0 %v647_v56  ;;  %v748_v55 = vld [vmem:[#allocation7 + $0x378] sm:$0xff]  ;;  %v683_v56 = vld [vmem:[#allocation7 + $0x170] sm:$0xff] }
  0x90   : > { %857 = vmatpush1.msra.mxu1 %v711_v58  ;;  %787 = vmatprep.subr.mxu0 %v646_v59  ;;  %v747_v58 = vld [vmem:[#allocation7 + $0x370] sm:$0xff]  ;;  %v682_v59 = vld [vmem:[#allocation7 + $0x168] sm:$0xff] }
  0x91   : > { %858 = vmatprep.subr.mxu1 %v710_v60  ;;  %788 = vmatpush1.msra.mxu0 %v645_v61  ;;  %v746_v60 = vld [vmem:[#allocation7 + $0x368] sm:$0xff]  ;;  %v681_v61 = vld [vmem:[#allocation7 + $0x160] sm:$0xff] }
  0x92   : > { %859 = vmatpush1.msra.mxu1 %v709_v62  ;;  %789 = vmatprep.subr.mxu0 %v644_v63  ;;  %v745_v62 = vld [vmem:[#allocation7 + $0x360] sm:$0xff]  ;;  %v680_v63 = vld [vmem:[#allocation7 + $0x158] sm:$0xff] }
  0x93   : > { %860 = vmatprep.subr.mxu1 %v708_v1  ;;  %790 = vmatpush1.msra.mxu0 %v643_v2  ;;  %v744_v1 = vld [vmem:[#allocation7 + $0x358] sm:$0xff]  ;;  %v679_v2 = vld [vmem:[#allocation7 + $0x150] sm:$0xff] }
  0x94   : > { %861 = vmatpush1.msra.mxu1 %v707_v3  ;;  %791 = vmatprep.subr.mxu0 %v642_v4  ;;  %v743_v3 = vld [vmem:[#allocation7 + $0x350] sm:$0xff]  ;;  %v678_v4 = vld [vmem:[#allocation7 + $0x148] sm:$0xff] }
  0x95   : > { %862 = vmatprep.subr.mxu1 %v706_v5  ;;  %792 = vmatpush1.msra.mxu0 %v641_v7  ;;  %v742_v5 = vld [vmem:[#allocation7 + $0x348] sm:$0xff]  ;;  %v677_v7 = vld [vmem:[#allocation7 + $0x140] sm:$0xff] }
  0x96   : > { %863 = vmatpush1.msra.mxu1 %v705_v9  ;;  %793 = vmatprep.subr.mxu0 %v640_v12  ;;  %v741_v9 = vld [vmem:[#allocation7 + $0x340] sm:$0xff]  ;;  %v676_v12 = vld [vmem:[#allocation7 + $0x138] sm:$0xff] }
  0x97   : > { %864 = vmatprep.subr.mxu1 %v704_v13  ;;  %794 = vmatpush1.msra.mxu0 %v639_v14  ;;  %v740_v13 = vld [vmem:[#allocation7 + $0x338] sm:$0xff]  ;;  %v675_v14 = vld [vmem:[#allocation7 + $0x130] sm:$0xff] }
  0x98   : > { %865 = vmatpush1.msra.mxu1 %v703_v15  ;;  %795 = vmatprep.subr.mxu0 %v638_v16  ;;  %v739_v15 = vld [vmem:[#allocation7 + $0x330] sm:$0xff]  ;;  %v674_v16 = vld [vmem:[#allocation7 + $0x128] sm:$0xff] }
  0x99   : > { %866 = vmatprep.subr.mxu1 %v702_v17  ;;  %796 = vmatpush1.msra.mxu0 %v637_v18  ;;  %v738_v17 = vld [vmem:[#allocation7 + $0x328] sm:$0xff]  ;;  %v673_v18 = vld [vmem:[#allocation7 + $0x120] sm:$0xff] }
  0x9a   : > { %867 = vmatpush1.msra.mxu1 %v701_v19  ;;  %797 = vmatprep.subr.mxu0 %v700_v20  ;;  %v737_v19 = vld [vmem:[#allocation7 + $0x320] sm:$0xff]  ;;  %v672_v20 = vld [vmem:[#allocation7 + $0x118] sm:$0xff] }
  0x9b   : > { %868 = vmatprep.subr.mxu1 %v764_v21  ;;  %798 = vmatpush2.msra.mxu0 %v699_v22  ;;  %v736_v21 = vld [vmem:[#allocation7 + $0x318] sm:$0xff]  ;;  %v671_v22 = vld [vmem:[#allocation7 + $0x110] sm:$0xff] }
  0x9c   : > { %869 = vmatpush2.msra.mxu1 %v763_v23  ;;  %799 = vmatprep.subr.mxu0 %v698_v24  ;;  %v735_v23 = vld [vmem:[#allocation7 + $0x310] sm:$0xff]  ;;  %v670_v24 = vld [vmem:[#allocation7 + $0x108] sm:$0xff] }
  0x9d   : > { %870 = vmatprep.subr.mxu1 %v762_v25  ;;  %800 = vmatpush2.msra.mxu0 %v697_v26  ;;  %v734_v25 = vld [vmem:[#allocation7 + $0x308] sm:$0xff]  ;;  %v669_v26 = vld [vmem:[#allocation7 + $0x100] sm:$0xff] }
  0x9e   : > { %871 = vmatpush2.msra.mxu1 %v761_v27  ;;  %801 = vmatprep.subr.mxu0 %v696_v28  ;;  %v733_v27 = vld [vmem:[#allocation7 + $0x300] sm:$0xff] }
  0x9f   : > { %872 = vmatprep.subr.mxu1 %v760_v29  ;;  %802 = vmatpush2.msra.mxu0 %v695_v30 }
  0xa0   : > { %873 = vmatpush2.msra.mxu1 %v759_v31  ;;  %803 = vmatprep.subr.mxu0 %v694_v32 }
  0xa1   : > { %874 = vmatprep.subr.mxu1 %v758_v33  ;;  %804 = vmatpush2.msra.mxu0 %v693_v34 }
  0xa2   : > { %875 = vmatpush2.msra.mxu1 %v757_v35  ;;  %805 = vmatprep.subr.mxu0 %v692_v36 }
  0xa3   : > { %876 = vmatprep.subr.mxu1 %v756_v37  ;;  %806 = vmatpush2.msra.mxu0 %v691_v38 }
  0xa4   : > { %877 = vmatpush2.msra.mxu1 %v755_v40  ;;  %807 = vmatprep.subr.mxu0 %v690_v41 }
  0xa5   : > { %878 = vmatprep.subr.mxu1 %v754_v42  ;;  %808 = vmatpush2.msra.mxu0 %v689_v43 }
  0xa6   : > { %879 = vmatpush2.msra.mxu1 %v753_v44  ;;  %809 = vmatprep.subr.mxu0 %v688_v45 }
  0xa7   : > { %880 = vmatprep.subr.mxu1 %v752_v46  ;;  %810 = vmatpush2.msra.mxu0 %v687_v47 }
  0xa8   : > { %881 = vmatpush2.msra.mxu1 %v751_v49  ;;  %811 = vmatprep.subr.mxu0 %v686_v50 }
  0xa9   : > { %882 = vmatprep.subr.mxu1 %v750_v51  ;;  %812 = vmatpush2.msra.mxu0 %v685_v52 }
  0xaa   : > { %883 = vmatpush2.msra.mxu1 %v749_v53  ;;  %813 = vmatprep.subr.mxu0 %v684_v54 }
  0xab   : > { %884 = vmatprep.subr.mxu1 %v748_v55  ;;  %814 = vmatpush2.msra.mxu0 %v683_v56 }
  0xac   : > { %885 = vmatpush2.msra.mxu1 %v747_v58  ;;  %815 = vmatprep.subr.mxu0 %v682_v59 }
  0xad   : > { %886 = vmatprep.subr.mxu1 %v746_v60  ;;  %816 = vmatpush2.msra.mxu0 %v681_v61 }
  0xae   : > { %887 = vmatpush2.msra.mxu1 %v745_v62  ;;  %817 = vmatprep.subr.mxu0 %v680_v63 }
  0xaf   : > { %888 = vmatprep.subr.mxu1 %v744_v1  ;;  %818 = vmatpush2.msra.mxu0 %v679_v2 }
  0xb0   : > { %889 = vmatpush2.msra.mxu1 %v743_v3  ;;  %819 = vmatprep.subr.mxu0 %v678_v4 }
  0xb1   : > { %890 = vmatprep.subr.mxu1 %v742_v5  ;;  %820 = vmatpush2.msra.mxu0 %v677_v7 }
  0xb2   : > { %891 = vmatpush2.msra.mxu1 %v741_v9  ;;  %821 = vmatprep.subr.mxu0 %v676_v12 }
  0xb3   : > { %892 = vmatprep.subr.mxu1 %v740_v13  ;;  %822 = vmatpush2.msra.mxu0 %v675_v14 }
  0xb4   : > { %893 = vmatpush2.msra.mxu1 %v739_v15  ;;  %823 = vmatprep.subr.mxu0 %v674_v16  ;;  %v2788_v15 = vmov 1966171168  }
  0xb5   : > { %894 = vmatprep.subr.mxu1 %v738_v17  ;;  %824 = vmatpush2.msra.mxu0 %v673_v18  ;;  %v939_v16 = vunpack.c.l.s4 %v2788_v15 }
  0xb6   : > { %895 = vmatpush2.msra.mxu1 %v737_v19  ;;  %825 = vmatprep.subr.mxu0 %v672_v20 }
  0xb7   : > { %896 = vmatprep.subr.mxu1 %v736_v21  ;;  %826 = vmatpush2.msra.mxu0 %v671_v22  ;;  %v940_v17 = vunpack.c.0.s8 %v939_v16 }
  0xb8   : > { %897 = vmatpush2.msra.mxu1 %v735_v23  ;;  %827 = vmatprep.subr.mxu0 %v670_v24 }
  0xb9   : > { %898 = vmatprep.subr.mxu1 %v734_v25  ;;  %828 = vmatpush2.msra.mxu0 %v669_v26  ;;  %v943_v21 = vsub.s32 %v940_v17, %v2925_v48 }
  0xba   : > { %829 = vmatprep.mubr.f32.mxu0 %v2939_v6  ;;  %899 = vmatpush2.msra.mxu1 %v733_v27  ;;  %v2789_v27 = vmov 0.0  }
  0xbb   : > { %900 = vmatprep.mubr.f32.mxu1 %v2941_v8  ;;  %830 = vmatmul.mubr.f32.vlgmr.msra.gmra.mxu0 %v2944_v10  ;;  %1060 = vst [vmem:[#allocation2 + $0x8] sm:$0xf0] %v2789_v27  ;;  %1059 = vst [vmem:[#allocation2] sm:$0xf0] %v2789_v27 }
  0xbc   : > { %901 = vmatmul.mubr.f32.vlgmr.msra.gmra.mxu1 %v2946_v11  ;;  %1351 = vmatprep.mubr.f32.mxu0 %v2789_v27 }
  0xbd   : > { %1631 = vmatprep.mubr.f32.mxu1 %v2789_v27 }
 0x139   : > { %v561_v28 = vpop.f32.mrf.mxu0 }
 0x13a   : > { %v632_v29 = vpop.f32.mrf.mxu1 }
 0x13b   : > { %v563_v30 = vpop.f32.mrf.mxu0  ;;  %v2956_v32 = vadd.f32 %v632_v29, %v561_v28 }
 0x13c   : > { %v634_v31 = vpop.f32.mrf.mxu1 }
 0x13d   : > { %v2958_v35 = vadd.f32 %v634_v31, %v563_v30  ;;  %v907_v8 = vmul.f32 %v2956_v32, %v2956_v32  ;;  %v993_v1 = vand.u32 2147483647, %v2956_v32 }
 0x13f   : > { %v908_v40 = vmul.f32 %v2958_v35, %v2958_v35  ;;  %v994_v4 = vand.u32 2147483647, %v2958_v35  ;;  %v995_v12 = vsel %vm961_vm0, %v993_v1, -inf  ;;  %v1218_v1 = vld [vmem:[#allocation9 + $0x7] ss:$8 sm:$0x3] }
 0x141   : > { %v996_v13 = vsel %vm961_vm0, %v994_v4, -inf  ;;  %v1227_v4 = vrot.slane %v1218_v1, %v2931_v57 }
 0x142   : > { %v997_v14 = vmax.f32 %v995_v12, %v996_v13 }
 0x17b   : > { %v831_v33 = vpop.f32.mrf.mxu0 }
 0x17c   : > { %v902_v34 = vpop.f32.mrf.mxu1 }
 0x17d   : > { %v2960_v36 = vadd.f32 %v902_v34, %v831_v33  ;;  %v833_v6 = vpop.f32.mrf.mxu0 }
 0x17e   : > { %v904_v37 = vpop.f32.mrf.mxu1 }
 0x17f   : > { %v909_v10 = vmul.f32 %v2960_v36, %v2960_v36  ;;  %v2966_v11 = vadd.f32 %v904_v37, %v833_v6  ;;  %v1026_v38 = vand.u32 2147483647, %v2960_v36 }
 0x181   : > { %v911_v41 = vadd.f32 %v909_v10, %v907_v8  ;;  %v910_v42 = vmul.f32 %v2966_v11, %v2966_v11  ;;  %v1027_v43 = vand.u32 2147483647, %v2966_v11  ;;  %v1028_v46 = vsel %vm961_vm0, %v1026_v38, -inf }
 0x183   : > { %v913_v44 = vadd.f32 1e-08, %v911_v41  ;;  %v912_v45 = vadd.f32 %v910_v42, %v908_v40  ;;  %v1029_v47 = vsel %vm961_vm0, %v1027_v43, -inf }
 0x184   : > { %v1030_v49 = vmax.f32 %v1028_v46, %v1029_v47 }
 0x185   : > { %2671 = vrsqrt.f32 %v913_v44  ;;  %v914_v50 = vadd.f32 1e-08, %v912_v45  ;;  %vm917_vm1 = vcmp.eq.f32.partialorder %v913_v44, inf  ;;  %v920_v54 = vand.u32 2147483648, %v913_v44 }
 0x186   : > { %1031 = vmax.xlane.f32.xlu1 %v1030_v49  ;;  %vm919_vm2 = vcmp.eq.f32.partialorder %v913_v44, 0.0 }
 0x187   : > { %2673 = vrsqrt.f32 %v914_v50  ;;  %vm924_vm3 = vcmp.eq.f32.partialorder %v914_v50, inf  ;;  %v927_v59 = vand.u32 2147483648, %v914_v50  ;;  %vm926_vm4 = vcmp.eq.f32.partialorder %v914_v50, 0.0 }
 0x192   : > { %v2672_v51 = vpop.eup %2671 }
 0x193   : > { %v916_v52 = vmul.f32 %v2672_v51, %v913_v44 }
 0x194   : > { %v2674_v53 = vpop.eup %2673 }
 0x195   : > { %v918_v55 = vsel %vm917_vm1, %v913_v44, %v916_v52  ;;  %v923_v56 = vmul.f32 %v2674_v53, %v914_v50  ;;  %v3047_v53 = vand.u32 127, %v475_v39 }
 0x196   : > { %v921_v58 = vsel %vm919_vm2, %v920_v54, %v918_v55  ;;  %v1242_v54 = vld [vmem:[#allocation9 + $0x10] ss:$8 sm:$0x3] }
 0x197   : > { %v925_v60 = vsel %vm924_vm3, %v914_v50, %v923_v56  ;;  %v929_v61 = vadd.f32 1.0, %v921_v58  ;;  %v959_v62 = vand.u32 2147483647, %v921_v58  ;;  %vm1238_vm6 = vcmp.lt.s32.totalorder %v3047_v53, 111 }
 0x198   : > { %v928_v63 = vsel %vm926_vm4, %v927_v59, %v925_v60  ;;  %v1247_v55 = vrot.slane %v1242_v54, %v2935_v0  ;;  %v1251_v56 = vrot.slane %v1242_v54, %v2931_v57  ;;  %vm1214_vm7 = vcmp.lt.s32.totalorder %v3047_v53, 112 }
 0x199   : > { %2675 = vlog2.f32 %v929_v61  ;;  %v960_v2 = vand.u32 2147483647, %v928_v63  ;;  %v930_v3 = vadd.f32 1.0, %v928_v63  ;;  %v962_v5 = vsel %vm961_vm0, %v959_v62, -inf }
 0x19a   : > { %vm1190_vm8 = vcmp.lt.s32.totalorder %v3047_v53, 113  ;;  %vm1166_vm9 = vcmp.lt.s32.totalorder %v3047_v53, 127  ;;  %vm1140_vm10 = vcmp.lt.s32.totalorder %v3047_v53, 1  ;;  %vm1116_vm11 = vcmp.lt.s32.totalorder %v3047_v53, 15 }
 0x19b   : > { %v963_v7 = vsel %vm961_vm0, %v960_v2, -inf  ;;  %2677 = vlog2.f32 %v930_v3  ;;  %v1223_v3 = vrot.slane %v1218_v1, %v2935_v0  ;;  %vm1092_vm12 = vcmp.lt.s32.totalorder %v3047_v53, 16 }
 0x19c   : > { %v964_v9 = vmax.f32 %v962_v5, %v963_v7  ;;  %v1194_v5 = vld [vmem:[#allocation9 + $0x6] ss:$8 sm:$0x3]  ;;  %vm1069_vm13 = vcmp.lt.s32.totalorder %v3047_v53, 17  ;;  %vm2507_vm0 = vcmask 0  }
 0x19d   : > { %v1199_v16 = vrot.slane %v1194_v5, %v2935_v0  ;;  %v1203_v17 = vrot.slane %v1194_v5, %v2931_v57 }
 0x19e   : > { %965 = vmax.xlane.f32.xlu0 %v964_v9 }
 0x1a2   : > { %998 = vmax.xlane.f32.xlu0 %v997_v14 }
 0x1a6   : > { %v2676_v18 = vpop.eup %2675 }
 0x1a7   : > { %v932_v20 = vmul.f32 0.6931472, %v2676_v18  ;;  %v1170_v18 = vld [vmem:[#allocation9 + $0x5] ss:$8 sm:$0x3] }
 0x1a8   : > { %v2678_v19 = vpop.eup %2677  ;;  %v1175_v25 = vrot.slane %v1170_v18, %v2935_v0 }
 0x1a9   : > { %v934_v22 = vmul.f32 0.6931472, %v2678_v19 }
 0x1ab   : > { %v937_v23 = vcombine.low %v932_v20, %v934_v22 }
 0x1ad   : > { %v944_v24 = vrot.slane %v937_v23, %v943_v21 }
 0x1af   : > { %v951_v26 = vrot.slane %v944_v24, %v943_v21 }
 0x1b1   : > { %957 = vst.msk [vmem:[#allocation2] ss:$8 sm:$0x3] %vm2984_vm5, %v951_v26  ;;  %v1179_v26 = vrot.slane %v1170_v18, %v2931_v57 }
 0x20f   : > { %v1032_v48 = vpop.xlane.xlu1 %1031 }
 0x210   : > { %v1033_v28 = vadd.f32 1e-06, %v1032_v48  ;;  %v1144_v48 = vld [vmem:[#allocation9 + $0x3] ss:$8 sm:$0x3] }
 0x212   : > { %2679 = vrcp.f32 %v1033_v28 }
 0x21f   : > { %v2680_v29 = vpop.eup %2679 }
 0x220   : > { %v1036_v30 = vmul.f32 %v2680_v29, %v2960_v36  ;;  %v1037_v31 = vmul.f32 %v2680_v29, %v2966_v11 }
 0x222   : > { %v1040_v33 = vcombine.low %v1036_v30, %v1037_v31 }
 0x224   : > { %v1047_v34 = vrot.slane %v1040_v33, %v943_v21 }
 0x226   : > { %v1054_v6 = vrot.slane %v1047_v34, %v943_v21  ;;  %v1149_v34 = vrot.slane %v1144_v48, %v2935_v0 }
 0x227   : > { %v966_v37 = vpop.xlane.xlu0 %965 }
 0x228   : > { %1057 = vst.msk [vmem:[#allocation2 + $0x3] ss:$8 sm:$0x3] %vm2984_vm5, %v1054_v6  ;;  %v967_v8 = vadd.f32 1e-06, %v966_v37  ;;  %v1153_v6 = vrot.slane %v1144_v48, %v2931_v57 }
 0x229   : > { %v1120_v37 = vld [vmem:[#allocation9 + $0x2] ss:$8 sm:$0x3] }
 0x22a   : > { %2681 = vrcp.f32 %v967_v8 }
 0x22b   : > { %v999_v10 = vpop.xlane.xlu0 %998 }
 0x22c   : > { %v1000_v38 = vadd.f32 1e-06, %v999_v10 }
 0x22e   : > { %2683 = vrcp.f32 %v1000_v38 }
 0x237   : > { %v2682_v40 = vpop.eup %2681 }
 0x238   : > { %v970_v41 = vmul.f32 %v2682_v40, %v921_v58  ;;  %v971_v42 = vmul.f32 %v2682_v40, %v928_v63 }
 0x23a   : > { %v974_v43 = vcombine.low %v970_v41, %v971_v42 }
 0x23b   : > { %v2684_v44 = vpop.eup %2683 }
 0x23c   : > { %v981_v36 = vrot.slane %v974_v43, %v943_v21  ;;  %v1003_v11 = vmul.f32 %v2684_v44, %v2956_v32  ;;  %v1004_v45 = vmul.f32 %v2684_v44, %v2958_v35  ;;  %v2798_v32 = vmov 0   ;;  %v3043_v35 = vld [vmem:[%s3497_s5] sm:$0xff] }
 0x23d   : > { %2666 = vset.pattern.permute.xlu1 %v2798_v32  ;;  %v1125_v43 = vrot.slane %v1120_v37, %v2935_v0  ;;  %v1129_v44 = vrot.slane %v1120_v37, %v2931_v57 }
 0x23e   : > { %v988_v46 = vrot.slane %v981_v36, %v943_v21  ;;  %v1007_v47 = vcombine.low %v1003_v11, %v1004_v45  ;;  %v1096_v36 = vld [vmem:[#allocation9 + $0x1] ss:$8 sm:$0x3] }
 0x23f   : > { %v1105_v32 = vrot.slane %v1096_v36, %v2931_v57 }
 0x240   : > { %991 = vst.msk [vmem:[#allocation2 + $0x1] ss:$8 sm:$0x3] %vm2984_vm5, %v988_v46  ;;  %v1014_v49 = vrot.slane %v1007_v47, %v943_v21 }
 0x242   : > { %v1021_v50 = vrot.slane %v1014_v49, %v943_v21 }
 0x244   : > { %1024 = vst.msk [vmem:[#allocation2 + $0x2] ss:$8 sm:$0x3] %vm2984_vm5, %v1021_v50 }
 0x24b   : > { %v3004_v51 = vld [vmem:[#allocation2 + $0x8] sm:$0xff]  ;;  %v3006_v52 = vld [vmem:[#allocation2] sm:$0xff] }
 0x24c   : > { %1236 = vrot.lane.b32.xlu0 %v3004_v51, %s2790_s10  ;;  %1234 = vrot.lane.b32.xlu1 %v3006_v52, %s2790_s10 }
 0x250   : > { %1188 = vrot.lane.b32.xlu0 %v3004_v51, %s2791_s11  ;;  %1210 = vrot.lane.b32.xlu1 %v3006_v52, %s2792_s12 }
 0x254   : > { %1164 = vrot.lane.b32.xlu0 %v3004_v51, %s2793_s13  ;;  %1212 = vrot.lane.b32.xlu1 %v3004_v51, %s2792_s12 }
 0x258   : > { %1138 = vrot.lane.b32.xlu0 %v3004_v51, %s2794_s14  ;;  %1186 = vrot.lane.b32.xlu1 %v3006_v52, %s2791_s11 }
 0x25c   : > { %1114 = vrot.lane.b32.xlu0 %v3004_v51, %s2795_s15  ;;  %1162 = vrot.lane.b32.xlu1 %v3006_v52, %s2793_s13 }
 0x260   : > { %1090 = vrot.lane.b32.xlu0 %v3004_v51, %s2796_s16  ;;  %1136 = vrot.lane.b32.xlu1 %v3006_v52, %s2794_s14 }
 0x264   : > { %1065 = vrot.lane.b32.xlu0 %v3004_v51, %s2797_s17  ;;  %1112 = vrot.lane.b32.xlu1 %v3006_v52, %s2795_s15 }
 0x268   : > { %1088 = vrot.lane.b32.xlu1 %v3006_v52, %s2796_s16 }
 0x26c   : > { %1063 = vrot.lane.b32.xlu1 %v3006_v52, %s2797_s17 }
 0x270   : > { %1280 = vperm.xlu1 %2666, %v3043_v35  }
 0x2be   : > { %v1237_v58 = vpop.permute.xlu0 %1236  ;;  %v1235_v59 = vpop.permute.xlu1 %1234 }
 0x2bf   : > { %v1239_v60 = vsel %vm1238_vm6, %v1235_v59, %v1237_v58  ;;  %v1240_v61 = vsel %vm1238_vm6, %v1237_v58, %v1235_v59 }
 0x2c0   : > { %v1254_v62 = vmul.f32 %v1247_v55, %v1239_v60  ;;  %v1255_v63 = vmul.f32 %v1251_v56, %v1240_v61 }
 0x2c2   : > { %v1189_v39 = vpop.permute.xlu0 %1188  ;;  %1301 = vmatprep.subr.mxu0 %v1255_v63  ;;  %v1211_v2 = vpop.permute.xlu1 %1210 }
 0x2c3   : > { %1302 = vmatpush1.msra.mxu0 %v1254_v62 }
 0x2c6   : > { %v1165_v7 = vpop.permute.xlu0 %1164  ;;  %v1213_v9 = vpop.permute.xlu1 %1212 }
 0x2c7   : > { %v1215_v12 = vsel %vm1214_vm7, %v1211_v2, %v1213_v9  ;;  %v1216_v13 = vsel %vm1214_vm7, %v1213_v9, %v1211_v2 }
 0x2c8   : > { %v1230_v14 = vmul.f32 %v1223_v3, %v1215_v12  ;;  %v1231_v15 = vmul.f32 %v1227_v4, %v1216_v13  ;;  %v1258_v4 = vld [vmem:[%s3496_s4] sm:$0xff] }
 0x2ca   : > { %1303 = vmatprep.subr.mxu0 %v1231_v15  ;;  %v1187_v19 = vpop.permute.xlu1 %1186  ;;  %v1139_v22 = vpop.permute.xlu0 %1138 }
 0x2cb   : > { %v1191_v20 = vsel %vm1190_vm8, %v1187_v19, %v1189_v39  ;;  %v1192_v21 = vsel %vm1190_vm8, %v1189_v39, %v1187_v19  ;;  %1304 = vmatpush1.msra.mxu0 %v1230_v14 }
 0x2cc   : > { %v1206_v23 = vmul.f32 %v1199_v16, %v1191_v20  ;;  %v1207_v24 = vmul.f32 %v1203_v17, %v1192_v21  ;;  %v2799_v16 = vmov 1   ;;  %v1522_v17 = vld [vmem:[#allocation9 + $0x10] ss:$8 sm:$0x3] }
 0x2cd   : > { %2667 = vset.pattern.permute.xlu0 %v2799_v16  ;;  %v1527_v19 = vrot.slane %v1522_v17, %v2935_v0  ;;  %v1531_v20 = vrot.slane %v1522_v17, %v2931_v57  ;;  %v1500_v21 = vld [vmem:[#allocation9 + $0x7] ss:$8 sm:$0x3] }
 0x2ce   : > { %1305 = vmatprep.subr.mxu0 %v1207_v24  ;;  %v1163_v28 = vpop.permute.xlu1 %1162  ;;  %v1115_v8 = vpop.permute.xlu0 %1114 }
 0x2cf   : > { %v1167_v29 = vsel %vm1166_vm9, %v1163_v28, %v1165_v7  ;;  %v1168_v30 = vsel %vm1166_vm9, %v1165_v7, %v1163_v28  ;;  %1306 = vmatpush1.msra.mxu0 %v1206_v23  ;;  %v1505_v28 = vrot.slane %v1500_v21, %v2935_v0 }
 0x2d0   : > { %v1182_v31 = vmul.f32 %v1175_v25, %v1167_v29  ;;  %v1183_v33 = vmul.f32 %v1179_v26, %v1168_v30  ;;  %v1509_v29 = vrot.slane %v1500_v21, %v2931_v57  ;;  %v1478_v30 = vld [vmem:[#allocation9 + $0x6] ss:$8 sm:$0x3] }
 0x2d2   : > { %1307 = vmatprep.subr.mxu0 %v1183_v33  ;;  %v1137_v10 = vpop.permute.xlu1 %1136  ;;  %v1091_v47 = vpop.permute.xlu0 %1090 }
 0x2d3   : > { %v1141_v38 = vsel %vm1140_vm10, %v1137_v10, %v1139_v22  ;;  %v1142_v40 = vsel %vm1140_vm10, %v1139_v22, %v1137_v10  ;;  %1308 = vmatpush1.msra.mxu0 %v1182_v31  ;;  %v1483_v10 = vrot.slane %v1478_v30, %v2935_v0 }
 0x2d4   : > { %v1156_v41 = vmul.f32 %v1149_v34, %v1142_v40  ;;  %v1157_v42 = vmul.f32 %v1153_v6, %v1141_v38  ;;  %1309 = vmatprep.subr.mxu0 %v3004_v51  ;;  %v1101_v51 = vrot.slane %v1096_v36, %v2935_v0  ;;  %v1487_v38 = vrot.slane %v1478_v30, %v2931_v57  ;;  %v1456_v40 = vld [vmem:[#allocation9 + $0x5] ss:$8 sm:$0x3] }
 0x2d5   : > { %1310 = vmatpush1.msra.mxu0 %v3006_v52  ;;  %v1072_v52 = vld [vmem:[#allocation9] ss:$8 sm:$0x3] }
 0x2d6   : > { %1311 = vmatprep.subr.mxu0 %v1157_v42  ;;  %v1113_v11 = vpop.permute.xlu1 %1112  ;;  %v1077_v60 = vrot.slane %v1072_v52, %v2935_v0  ;;  %v1081_v61 = vrot.slane %v1072_v52, %v2931_v57  ;;  %v1066_v62 = vpop.permute.xlu0 %1065 }
 0x2d7   : > { %v1117_v45 = vsel %vm1116_vm11, %v1113_v11, %v1115_v8  ;;  %v1118_v46 = vsel %vm1116_vm11, %v1115_v8, %v1113_v11  ;;  %1312 = vmatpush1.msra.mxu0 %v1156_v41 }
 0x2d8   : > { %v1132_v49 = vmul.f32 %v1125_v43, %v1118_v46  ;;  %v1133_v50 = vmul.f32 %v1129_v44, %v1117_v45  ;;  %v1461_v45 = vrot.slane %v1456_v40, %v2935_v0  ;;  %v1465_v46 = vrot.slane %v1456_v40, %v2931_v57 }
 0x2da   : > { %1313 = vmatprep.subr.mxu0 %v1133_v50  ;;  %v1089_v54 = vpop.permute.xlu1 %1088 }
 0x2db   : > { %v1093_v55 = vsel %vm1092_vm12, %v1089_v54, %v1091_v47  ;;  %v1094_v56 = vsel %vm1092_vm12, %v1091_v47, %v1089_v54  ;;  %1314 = vmatpush1.msra.mxu0 %v1132_v49  ;;  %v1432_v47 = vld [vmem:[#allocation9 + $0x3] ss:$8 sm:$0x3] }
 0x2dc   : > { %v1108_v58 = vmul.f32 %v1101_v51, %v1094_v56  ;;  %v1109_v59 = vmul.f32 %v1105_v32, %v1093_v55  ;;  %v1437_v55 = vrot.slane %v1432_v47, %v2935_v0  ;;  %v1441_v56 = vrot.slane %v1432_v47, %v2931_v57 }
 0x2de   : > { %1315 = vmatprep.subr.mxu0 %v1109_v59  ;;  %v1064_v63 = vpop.permute.xlu1 %1063 }
 0x2df   : > { %v1070_v1 = vsel %vm1069_vm13, %v1064_v63, %v1066_v62  ;;  %v1071_v39 = vsel %vm1069_vm13, %v1066_v62, %v1064_v63  ;;  %1316 = vmatpush1.msra.mxu0 %v1108_v58  ;;  %v1410_v58 = vld [vmem:[#allocation9 + $0x2] ss:$8 sm:$0x3] }
 0x2e0   : > { %v1084_v2 = vmul.f32 %v1077_v60, %v1071_v39  ;;  %v1085_v3 = vmul.f32 %v1081_v61, %v1070_v1  ;;  %v1415_v39 = vrot.slane %v1410_v58, %v2935_v0 }
 0x2e2   : > { %1317 = vmatprep.subr.mxu0 %v1085_v3  ;;  %v1388_v3 = vld [vmem:[#allocation9 + $0x1] ss:$8 sm:$0x3] }
 0x2e3   : > { %1318 = vmatpush1.msra.mxu0 %v1084_v2  ;;  %v1419_v2 = vrot.slane %v1410_v58, %v2931_v57  ;;  %v1393_v16 = vrot.slane %v1388_v3, %v2935_v0  ;;  %v1397_v17 = vrot.slane %v1388_v3, %v2931_v57 }
 0x2e4   : > { %2599 = vmatmul.mubr.msk.f32.vlgmr.msra.gmra.mxu0 %vm1283_vm14, %v1258_v4 }
 0x2e5   : > { %1911 = vmatprep.mubr.f32.mxu0 %v2789_v27 }
 0x2eb   : > { %v1281_v5 = vpop.permute.xlu1 %1280 }
 0x3a4   : > { %v1353_v7 = vpop.f32.mrf.mxu0 }
 0x3a5   : > { %v1354_v9 = vadd.f32 %v1353_v7, %v1281_v5 }
 0x3a6   : > { %v1355_v12 = vpop.f32.mrf.mxu0 }
 0x3a7   : > { %v3112_v13 = vmax.f32 %v1354_v9, 0.0  ;;  %v1356_v14 = vadd.f32 %v1355_v12, %v1281_v5 }
 0x3a9   : > { %v3114_v15 = vmax.f32 %v1356_v14, 0.0  ;;  %1516 = vrot.lane.b32.xlu0 %v3112_v13, %s2790_s10 }
 0x3ab   : > { %1518 = vrot.lane.b32.xlu1 %v3114_v15, %s2790_s10 }
 0x3ad   : > { %1494 = vrot.lane.b32.xlu0 %v3112_v13, %s2792_s12 }
 0x3af   : > { %1496 = vrot.lane.b32.xlu1 %v3114_v15, %s2792_s12 }
 0x3b1   : > { %1472 = vrot.lane.b32.xlu0 %v3112_v13, %s2791_s11 }
 0x3b3   : > { %1474 = vrot.lane.b32.xlu1 %v3114_v15, %s2791_s11 }
 0x3b5   : > { %1450 = vrot.lane.b32.xlu0 %v3112_v13, %s2793_s13 }
 0x3b7   : > { %1452 = vrot.lane.b32.xlu1 %v3114_v15, %s2793_s13 }
 0x3b9   : > { %1426 = vrot.lane.b32.xlu0 %v3112_v13, %s2794_s14 }
 0x3bb   : > { %1428 = vrot.lane.b32.xlu1 %v3114_v15, %s2794_s14 }
 0x3bd   : > { %1404 = vrot.lane.b32.xlu0 %v3112_v13, %s2795_s15 }
 0x3bf   : > { %1406 = vrot.lane.b32.xlu1 %v3114_v15, %s2795_s15 }
 0x3c1   : > { %1382 = vrot.lane.b32.xlu0 %v3112_v13, %s2796_s16 }
 0x3c3   : > { %1384 = vrot.lane.b32.xlu1 %v3114_v15, %s2796_s16 }
 0x3c5   : > { %1360 = vrot.lane.b32.xlu0 %v3112_v13, %s2797_s17 }
 0x3c7   : > { %1362 = vrot.lane.b32.xlu1 %v3114_v15, %s2797_s17 }
 0x3c9   : > { %1561 = vperm.xlu0 %2667, %v3043_v35  }
 0x41b   : > { %v1517_v18 = vpop.permute.xlu0 %1516 }
 0x41d   : > { %v1519_v22 = vpop.permute.xlu1 %1518 }
 0x41e   : > { %v1520_v23 = vsel %vm1238_vm6, %v1517_v18, %v1519_v22  ;;  %v1521_v24 = vsel %vm1238_vm6, %v1519_v22, %v1517_v18  ;;  %v1366_v18 = vld [vmem:[#allocation9] ss:$8 sm:$0x3] }
 0x41f   : > { %v1534_v25 = vmul.f32 %v1527_v19, %v1520_v23  ;;  %v1535_v26 = vmul.f32 %v1531_v20, %v1521_v24  ;;  %v1495_v48 = vpop.permute.xlu0 %1494  ;;  %v1371_v24 = vrot.slane %v1366_v18, %v2935_v0 }
 0x421   : > { %v1497_v31 = vpop.permute.xlu1 %1496  ;;  %1581 = vmatprep.subr.mxu1 %v1535_v26 }
 0x422   : > { %v1498_v33 = vsel %vm1214_vm7, %v1495_v48, %v1497_v31  ;;  %v1499_v34 = vsel %vm1214_vm7, %v1497_v31, %v1495_v48  ;;  %1582 = vmatpush1.msra.mxu1 %v1534_v25  ;;  %v1375_v25 = vrot.slane %v1366_v18, %v2931_v57 }
 0x423   : > { %v1512_v6 = vmul.f32 %v1505_v28, %v1498_v33  ;;  %v1513_v37 = vmul.f32 %v1509_v29, %v1499_v34  ;;  %v1473_v8 = vpop.permute.xlu0 %1472  ;;  %v2600_v33 = vld [vmem:[%s3496_s4 + $0x8] sm:$0xff] }
 0x425   : > { %v1475_v41 = vpop.permute.xlu1 %1474  ;;  %1583 = vmatprep.subr.mxu1 %v1513_v37 }
 0x426   : > { %v1476_v42 = vsel %vm1190_vm8, %v1473_v8, %v1475_v41  ;;  %v1477_v43 = vsel %vm1190_vm8, %v1475_v41, %v1473_v8  ;;  %1584 = vmatpush1.msra.mxu1 %v1512_v6  ;;  %v2800_v41 = vmov 2  }
 0x427   : > { %v1490_v44 = vmul.f32 %v1483_v10, %v1476_v42  ;;  %v1491_v36 = vmul.f32 %v1487_v38, %v1477_v43  ;;  %v1451_v11 = vpop.permute.xlu0 %1450  ;;  %2668 = vset.pattern.permute.xlu0 %v2800_v41  ;;  %v1802_v42 = vld [vmem:[#allocation9 + $0x10] ss:$8 sm:$0x3] }
 0x429   : > { %v1453_v49 = vpop.permute.xlu1 %1452  ;;  %1585 = vmatprep.subr.mxu1 %v1491_v36  ;;  %v1807_v36 = vrot.slane %v1802_v42, %v2935_v0 }
 0x42a   : > { %v1454_v50 = vsel %vm1166_vm9, %v1451_v11, %v1453_v49  ;;  %v1455_v51 = vsel %vm1166_vm9, %v1453_v49, %v1451_v11  ;;  %1586 = vmatpush1.msra.mxu1 %v1490_v44  ;;  %v1811_v11 = vrot.slane %v1802_v42, %v2931_v57 }
 0x42b   : > { %v1468_v32 = vmul.f32 %v1461_v45, %v1454_v50  ;;  %v1469_v52 = vmul.f32 %v1465_v46, %v1455_v51  ;;  %v1427_v54 = vpop.permute.xlu0 %1426  ;;  %v1780_v45 = vld [vmem:[#allocation9 + $0x7] ss:$8 sm:$0x3] }
 0x42d   : > { %v1429_v59 = vpop.permute.xlu1 %1428  ;;  %1587 = vmatprep.subr.mxu1 %v1469_v52  ;;  %v1785_v52 = vrot.slane %v1780_v45, %v2935_v0 }
 0x42e   : > { %v1430_v60 = vsel %vm1140_vm10, %v1427_v54, %v1429_v59  ;;  %v1431_v61 = vsel %vm1140_vm10, %v1429_v59, %v1427_v54  ;;  %1588 = vmatpush1.msra.mxu1 %v1468_v32  ;;  %v1789_v54 = vrot.slane %v1780_v45, %v2931_v57 }
 0x42f   : > { %v1444_v62 = vmul.f32 %v1437_v55, %v1431_v61  ;;  %v1445_v63 = vmul.f32 %v1441_v56, %v1430_v60  ;;  %1589 = vmatprep.subr.mxu1 %v3114_v15  ;;  %v1405_v1 = vpop.permute.xlu0 %1404  ;;  %v1758_v55 = vld [vmem:[#allocation9 + $0x6] ss:$8 sm:$0x3] }
 0x430   : > { %1590 = vmatpush1.msra.mxu1 %v3112_v13 }
 0x431   : > { %v1407_v4 = vpop.permute.xlu1 %1406  ;;  %1591 = vmatprep.subr.mxu1 %v1445_v63  ;;  %v1763_v63 = vrot.slane %v1758_v55, %v2935_v0 }
 0x432   : > { %v1408_v5 = vsel %vm1116_vm11, %v1405_v1, %v1407_v4  ;;  %v1409_v7 = vsel %vm1116_vm11, %v1407_v4, %v1405_v1  ;;  %1592 = vmatpush1.msra.mxu1 %v1444_v62  ;;  %v1767_v1 = vrot.slane %v1758_v55, %v2931_v57 }
 0x433   : > { %v1422_v9 = vmul.f32 %v1415_v39, %v1409_v7  ;;  %v1423_v12 = vmul.f32 %v1419_v2, %v1408_v5  ;;  %v1383_v14 = vpop.permute.xlu0 %1382  ;;  %v1736_v39 = vld [vmem:[#allocation9 + $0x5] ss:$8 sm:$0x3] }
 0x435   : > { %v1385_v19 = vpop.permute.xlu1 %1384  ;;  %1593 = vmatprep.subr.mxu1 %v1423_v12  ;;  %v1741_v12 = vrot.slane %v1736_v39, %v2935_v0 }
 0x436   : > { %v1386_v20 = vsel %vm1092_vm12, %v1383_v14, %v1385_v19  ;;  %v1387_v21 = vsel %vm1092_vm12, %v1385_v19, %v1383_v14  ;;  %1594 = vmatpush1.msra.mxu1 %v1422_v9  ;;  %v1745_v14 = vrot.slane %v1736_v39, %v2931_v57 }
 0x437   : > { %v1400_v22 = vmul.f32 %v1393_v16, %v1387_v21  ;;  %v1401_v23 = vmul.f32 %v1397_v17, %v1386_v20  ;;  %v1361_v26 = vpop.permute.xlu0 %1360  ;;  %v1712_v16 = vld [vmem:[#allocation9 + $0x3] ss:$8 sm:$0x3] }
 0x439   : > { %v1363_v48 = vpop.permute.xlu1 %1362  ;;  %1595 = vmatprep.subr.mxu1 %v1401_v23  ;;  %v1721_v23 = vrot.slane %v1712_v16, %v2931_v57 }
 0x43a   : > { %v1364_v28 = vsel %vm1069_vm13, %v1361_v26, %v1363_v48  ;;  %v1365_v29 = vsel %vm1069_vm13, %v1363_v48, %v1361_v26  ;;  %1596 = vmatpush1.msra.mxu1 %v1400_v22  ;;  %v1717_v22 = vrot.slane %v1712_v16, %v2935_v0 }
 0x43b   : > { %v1378_v30 = vmul.f32 %v1371_v24, %v1365_v29  ;;  %v1379_v31 = vmul.f32 %v1375_v25, %v1364_v28  ;;  %v1690_v24 = vld [vmem:[#allocation9 + $0x2] ss:$8 sm:$0x3] }
 0x43d   : > { %1597 = vmatprep.subr.mxu1 %v1379_v31  ;;  %v1695_v31 = vrot.slane %v1690_v24, %v2935_v0 }
 0x43e   : > { %1598 = vmatpush1.msra.mxu1 %v1378_v30 }
 0x43f   : > { %2601 = vmatmul.mubr.msk.f32.vlgmr.msra.gmra.mxu1 %vm1283_vm14, %v2600_v33  ;;  %v1699_v33 = vrot.slane %v1690_v24, %v2931_v57 }
 0x440   : > { %2193 = vmatprep.mubr.f32.mxu1 %v2789_v27 }
 0x444   : > { %v1562_v34 = vpop.permute.xlu0 %1561 }
 0x4ff   : > { %v1633_v6 = vpop.f32.mrf.mxu1 }
 0x500   : > { %v1634_v37 = vadd.f32 %v1633_v6, %v1562_v34 }
 0x501   : > { %v1635_v8 = vpop.f32.mrf.mxu1 }
 0x502   : > { %v3204_v10 = vmax.f32 %v1634_v37, 0.0  ;;  %v1636_v38 = vadd.f32 %v1635_v8, %v1562_v34  ;;  %v1668_v34 = vld [vmem:[#allocation9 + $0x1] ss:$8 sm:$0x3] }
 0x504   : > { %1774 = vrot.lane.b32.xlu0 %v3204_v10, %s2792_s12  ;;  %1796 = vrot.lane.b32.xlu1 %v3204_v10, %s2790_s10  ;;  %v3210_v40 = vmax.f32 %v1636_v38, 0.0 }
 0x508   : > { %1752 = vrot.lane.b32.xlu0 %v3204_v10, %s2791_s11  ;;  %1798 = vrot.lane.b32.xlu1 %v3210_v40, %s2790_s10 }
 0x50c   : > { %1730 = vrot.lane.b32.xlu0 %v3204_v10, %s2793_s13  ;;  %1776 = vrot.lane.b32.xlu1 %v3210_v40, %s2792_s12 }
 0x510   : > { %1706 = vrot.lane.b32.xlu0 %v3204_v10, %s2794_s14  ;;  %1754 = vrot.lane.b32.xlu1 %v3210_v40, %s2791_s11 }
 0x514   : > { %1684 = vrot.lane.b32.xlu0 %v3204_v10, %s2795_s15  ;;  %1732 = vrot.lane.b32.xlu1 %v3210_v40, %s2793_s13 }
 0x518   : > { %1662 = vrot.lane.b32.xlu0 %v3204_v10, %s2796_s16  ;;  %1708 = vrot.lane.b32.xlu1 %v3210_v40, %s2794_s14 }
 0x51c   : > { %1640 = vrot.lane.b32.xlu0 %v3204_v10, %s2797_s17  ;;  %1686 = vrot.lane.b32.xlu1 %v3210_v40, %s2795_s15 }
 0x520   : > { %1664 = vrot.lane.b32.xlu1 %v3210_v40, %s2796_s16  ;;  %1841 = vperm.xlu0 %2668, %v3043_v35  }
 0x524   : > { %1642 = vrot.lane.b32.xlu1 %v3210_v40, %s2797_s17 }
 0x576   : > { %v1775_v43 = vpop.permute.xlu0 %1774  ;;  %v1797_v44 = vpop.permute.xlu1 %1796 }
 0x57a   : > { %v1753_v46 = vpop.permute.xlu0 %1752  ;;  %v1799_v47 = vpop.permute.xlu1 %1798 }
 0x57b   : > { %v1800_v49 = vsel %vm1238_vm6, %v1797_v44, %v1799_v47  ;;  %v1801_v50 = vsel %vm1238_vm6, %v1799_v47, %v1797_v44  ;;  %v1646_v44 = vld [vmem:[#allocation9] ss:$8 sm:$0x3] }
 0x57c   : > { %v1814_v51 = vmul.f32 %v1807_v36, %v1800_v49  ;;  %v1815_v32 = vmul.f32 %v1811_v11, %v1801_v50  ;;  %v1651_v47 = vrot.slane %v1646_v44, %v2935_v0  ;;  %v1655_v49 = vrot.slane %v1646_v44, %v2931_v57 }
 0x57e   : > { %v1731_v56 = vpop.permute.xlu0 %1730  ;;  %1861 = vmatprep.subr.mxu0 %v1815_v32  ;;  %v1777_v58 = vpop.permute.xlu1 %1776 }
 0x57f   : > { %v1778_v59 = vsel %vm1214_vm7, %v1775_v43, %v1777_v58  ;;  %v1779_v60 = vsel %vm1214_vm7, %v1777_v58, %v1775_v43  ;;  %1862 = vmatpush1.msra.mxu0 %v1814_v51  ;;  %v1677_v43 = vrot.slane %v1668_v34, %v2931_v57 }
 0x580   : > { %v1792_v61 = vmul.f32 %v1785_v52, %v1778_v59  ;;  %v1793_v62 = vmul.f32 %v1789_v54, %v1779_v60 }
 0x582   : > { %1863 = vmatprep.subr.mxu0 %v1793_v62  ;;  %v1755_v2 = vpop.permute.xlu1 %1754  ;;  %v1707_v5 = vpop.permute.xlu0 %1706 }
 0x583   : > { %v1756_v3 = vsel %vm1190_vm8, %v1753_v46, %v1755_v2  ;;  %v1757_v4 = vsel %vm1190_vm8, %v1755_v2, %v1753_v46  ;;  %1864 = vmatpush1.msra.mxu0 %v1792_v61 }
 0x584   : > { %v1770_v7 = vmul.f32 %v1763_v63, %v1756_v3  ;;  %v1771_v9 = vmul.f32 %v1767_v1, %v1757_v4 }
 0x586   : > { %1865 = vmatprep.subr.mxu0 %v1771_v9  ;;  %v1733_v17 = vpop.permute.xlu1 %1732  ;;  %v1685_v25 = vpop.permute.xlu0 %1684 }
 0x587   : > { %v1734_v18 = vsel %vm1166_vm9, %v1731_v56, %v1733_v17  ;;  %v1735_v19 = vsel %vm1166_vm9, %v1733_v17, %v1731_v56  ;;  %1866 = vmatpush1.msra.mxu0 %v1770_v7  ;;  %v2602_v56 = vld [vmem:[%s3496_s4 + $0x10] sm:$0xff]  ;;  %v2062_v7 = vld [vmem:[#allocation9 + $0x7] ss:$8 sm:$0x3] }
 0x588   : > { %v1748_v20 = vmul.f32 %v1741_v12, %v1734_v18  ;;  %v1749_v21 = vmul.f32 %v1745_v14, %v1735_v19  ;;  %v2067_v19 = vrot.slane %v2062_v7, %v2935_v0 }
 0x58a   : > { %1867 = vmatprep.subr.mxu0 %v1749_v21  ;;  %v1709_v26 = vpop.permute.xlu1 %1708  ;;  %v1663_v38 = vpop.permute.xlu0 %1662  ;;  %v2040_v21 = vld [vmem:[#allocation9 + $0x6] ss:$8 sm:$0x3] }
 0x58b   : > { %v1710_v48 = vsel %vm1140_vm10, %v1707_v5, %v1709_v26  ;;  %v1711_v28 = vsel %vm1140_vm10, %v1709_v26, %v1707_v5  ;;  %1868 = vmatpush1.msra.mxu0 %v1748_v20  ;;  %v2071_v20 = vrot.slane %v2062_v7, %v2931_v57 }
 0x58c   : > { %v1724_v29 = vmul.f32 %v1717_v22, %v1711_v28  ;;  %v1725_v30 = vmul.f32 %v1721_v23, %v1710_v48  ;;  %1869 = vmatprep.subr.mxu0 %v3210_v40  ;;  %v1673_v40 = vrot.slane %v1668_v34, %v2935_v0  ;;  %v2045_v28 = vrot.slane %v2040_v21, %v2935_v0 }
 0x58d   : > { %1870 = vmatpush1.msra.mxu0 %v3204_v10 }
 0x58e   : > { %1871 = vmatprep.subr.mxu0 %v1725_v30  ;;  %v1687_v6 = vpop.permute.xlu1 %1686  ;;  %v1641_v50 = vpop.permute.xlu0 %1640  ;;  %v2018_v30 = vld [vmem:[#allocation9 + $0x5] ss:$8 sm:$0x3] }
 0x58f   : > { %v1688_v37 = vsel %vm1116_vm11, %v1685_v25, %v1687_v6  ;;  %v1689_v8 = vsel %vm1116_vm11, %v1687_v6, %v1685_v25  ;;  %1872 = vmatpush1.msra.mxu0 %v1724_v29  ;;  %v2049_v29 = vrot.slane %v2040_v21, %v2931_v57  ;;  %v2604_v21 = vld [vmem:[%s3496_s4 + $0x18] sm:$0xff] }
 0x590   : > { %v1702_v41 = vmul.f32 %v1695_v31, %v1689_v8  ;;  %v1703_v42 = vmul.f32 %v1699_v33, %v1688_v37 }
 0x592   : > { %1873 = vmatprep.subr.mxu0 %v1703_v42  ;;  %v1665_v10 = vpop.permute.xlu1 %1664  ;;  %v1994_v42 = vld [vmem:[#allocation9 + $0x3] ss:$8 sm:$0x3] }
 0x593   : > { %v1666_v36 = vsel %vm1092_vm12, %v1663_v38, %v1665_v10  ;;  %v1667_v11 = vsel %vm1092_vm12, %v1665_v10, %v1663_v38  ;;  %1874 = vmatpush1.msra.mxu0 %v1702_v41  ;;  %v2023_v38 = vrot.slane %v2018_v30, %v2935_v0  ;;  %v2027_v41 = vrot.slane %v2018_v30, %v2931_v57  ;;  %v2364_v30 = vld [vmem:[#allocation9 + $0x10] ss:$8 sm:$0x3] }
 0x594   : > { %v1680_v45 = vmul.f32 %v1673_v40, %v1667_v11  ;;  %v1681_v46 = vmul.f32 %v1677_v43, %v1666_v36  ;;  %v1999_v11 = vrot.slane %v1994_v42, %v2935_v0 }
 0x596   : > { %1875 = vmatprep.subr.mxu0 %v1681_v46  ;;  %v1643_v51 = vpop.permute.xlu1 %1642  ;;  %v1972_v46 = vld [vmem:[#allocation9 + $0x2] ss:$8 sm:$0x3] }
 0x597   : > { %v1644_v32 = vsel %vm1069_vm13, %v1641_v50, %v1643_v51  ;;  %v1645_v52 = vsel %vm1069_vm13, %v1643_v51, %v1641_v50  ;;  %1876 = vmatpush1.msra.mxu0 %v1680_v45  ;;  %v2003_v45 = vrot.slane %v1994_v42, %v2931_v57 }
 0x598   : > { %v1658_v54 = vmul.f32 %v1651_v47, %v1645_v52  ;;  %v1659_v55 = vmul.f32 %v1655_v49, %v1644_v32 }
 0x59a   : > { %1877 = vmatprep.subr.mxu0 %v1659_v55  ;;  %v1981_v55 = vrot.slane %v1972_v46, %v2931_v57 }
 0x59b   : > { %1878 = vmatpush1.msra.mxu0 %v1658_v54  ;;  %v1842_v58 = vpop.permute.xlu0 %1841  ;;  %v1977_v54 = vrot.slane %v1972_v46, %v2935_v0 }
 0x59c   : > { %2603 = vmatmul.mubr.msk.f32.vlgmr.msra.gmra.mxu0 %vm1283_vm14, %v2602_v56  ;;  %v1950_v56 = vld [vmem:[#allocation9 + $0x1] ss:$8 sm:$0x3] }
 0x59d   : > { %2473 = vmatprep.mubr.f32.mxu0 %v2789_v27  ;;  %v2801_v27 = vmov 3  }
 0x59e   : > { %2669 = vset.pattern.permute.xlu0 %v2801_v27  ;;  %v1959_v27 = vrot.slane %v1950_v56, %v2931_v57 }
 0x65c   : > { %v1913_v59 = vpop.f32.mrf.mxu0 }
 0x65d   : > { %v1914_v60 = vadd.f32 %v1913_v59, %v1842_v58 }
 0x65e   : > { %v1915_v61 = vpop.f32.mrf.mxu0 }
 0x65f   : > { %v1918_v62 = vadd.f32 %v1914_v60, %v3112_v13  ;;  %v1916_v63 = vadd.f32 %v1915_v61, %v1842_v58  ;;  %v2084_v13 = vld [vmem:[#allocation9 + $0x10] ss:$8 sm:$0x3] }
 0x660   : > { %v2089_v4 = vrot.slane %v2084_v13, %v2935_v0  ;;  %v2093_v5 = vrot.slane %v2084_v13, %v2931_v57  ;;  %v1928_v13 = vld [vmem:[#allocation9] ss:$8 sm:$0x3] }
 0x661   : > { %v3297_v1 = vmax.f32 %v1918_v62, 0.0  ;;  %v1919_v39 = vadd.f32 %v1916_v63, %v3114_v15 }
 0x663   : > { %2056 = vrot.lane.b32.xlu0 %v3297_v1, %s2792_s12  ;;  %2078 = vrot.lane.b32.xlu1 %v3297_v1, %s2790_s10  ;;  %v3304_v2 = vmax.f32 %v1919_v39, 0.0  ;;  %v1955_v39 = vrot.slane %v1950_v56, %v2935_v0 }
 0x667   : > { %2034 = vrot.lane.b32.xlu0 %v3297_v1, %s2791_s11  ;;  %2080 = vrot.lane.b32.xlu1 %v3304_v2, %s2790_s10 }
 0x66b   : > { %2012 = vrot.lane.b32.xlu0 %v3297_v1, %s2793_s13  ;;  %2058 = vrot.lane.b32.xlu1 %v3304_v2, %s2792_s12 }
 0x66f   : > { %1988 = vrot.lane.b32.xlu0 %v3297_v1, %s2794_s14  ;;  %2036 = vrot.lane.b32.xlu1 %v3304_v2, %s2791_s11 }
 0x673   : > { %1966 = vrot.lane.b32.xlu0 %v3297_v1, %s2795_s15  ;;  %2014 = vrot.lane.b32.xlu1 %v3304_v2, %s2793_s13 }
 0x677   : > { %1944 = vrot.lane.b32.xlu0 %v3297_v1, %s2796_s16  ;;  %1990 = vrot.lane.b32.xlu1 %v3304_v2, %s2794_s14 }
 0x67b   : > { %1922 = vrot.lane.b32.xlu0 %v3297_v1, %s2797_s17  ;;  %1968 = vrot.lane.b32.xlu1 %v3304_v2, %s2795_s15 }
 0x67f   : > { %1946 = vrot.lane.b32.xlu1 %v3304_v2, %s2796_s16  ;;  %2123 = vperm.xlu0 %2669, %v3043_v35  }
 0x683   : > { %1924 = vrot.lane.b32.xlu1 %v3304_v2, %s2797_s17 }
 0x6d5   : > { %v2057_v15 = vpop.permute.xlu0 %2056  ;;  %v2079_v3 = vpop.permute.xlu1 %2078 }
 0x6d9   : > { %v2035_v9 = vpop.permute.xlu0 %2034  ;;  %v2081_v12 = vpop.permute.xlu1 %2080 }
 0x6da   : > { %v2082_v14 = vsel %vm1238_vm6, %v2079_v3, %v2081_v12  ;;  %v2083_v16 = vsel %vm1238_vm6, %v2081_v12, %v2079_v3  ;;  %v1937_v12 = vrot.slane %v1928_v13, %v2931_v57 }
 0x6db   : > { %v2096_v17 = vmul.f32 %v2089_v4, %v2082_v14  ;;  %v2097_v18 = vmul.f32 %v2093_v5, %v2083_v16 }
 0x6dd   : > { %v2013_v22 = vpop.permute.xlu0 %2012  ;;  %2143 = vmatprep.subr.mxu1 %v2097_v18  ;;  %v2059_v23 = vpop.permute.xlu1 %2058 }
 0x6de   : > { %v2060_v24 = vsel %vm1214_vm7, %v2057_v15, %v2059_v23  ;;  %v2061_v25 = vsel %vm1214_vm7, %v2059_v23, %v2057_v15  ;;  %2144 = vmatpush1.msra.mxu1 %v2096_v17 }
 0x6df   : > { %v2074_v26 = vmul.f32 %v2067_v19, %v2060_v24  ;;  %v2075_v48 = vmul.f32 %v2071_v20, %v2061_v25 }
 0x6e1   : > { %2145 = vmatprep.subr.mxu1 %v2075_v48  ;;  %v2037_v31 = vpop.permute.xlu1 %2036  ;;  %v1989_v6 = vpop.permute.xlu0 %1988 }
 0x6e2   : > { %v2038_v33 = vsel %vm1190_vm8, %v2035_v9, %v2037_v31  ;;  %v2039_v34 = vsel %vm1190_vm8, %v2037_v31, %v2035_v9  ;;  %2146 = vmatpush1.msra.mxu1 %v2074_v26  ;;  %v1933_v9 = vrot.slane %v1928_v13, %v2935_v0 }
 0x6e3   : > { %v2052_v37 = vmul.f32 %v2045_v28, %v2038_v33  ;;  %v2053_v8 = vmul.f32 %v2049_v29, %v2039_v34  ;;  %v2802_v29 = vmov 4   ;;  %v2369_v34 = vrot.slane %v2364_v30, %v2935_v0 }
 0x6e4   : > { %2670 = vset.pattern.permute.xlu0 %v2802_v29 }
 0x6e5   : > { %2147 = vmatprep.subr.mxu1 %v2053_v8  ;;  %v2015_v40 = vpop.permute.xlu1 %2014  ;;  %v1967_v47 = vpop.permute.xlu0 %1966 }
 0x6e6   : > { %v2016_v43 = vsel %vm1166_vm9, %v2013_v22, %v2015_v40  ;;  %v2017_v44 = vsel %vm1166_vm9, %v2015_v40, %v2013_v22  ;;  %2148 = vmatpush1.msra.mxu1 %v2052_v37  ;;  %v2342_v37 = vld [vmem:[#allocation9 + $0x7] ss:$8 sm:$0x3] }
 0x6e7   : > { %v2030_v10 = vmul.f32 %v2023_v38, %v2016_v43  ;;  %v2031_v36 = vmul.f32 %v2027_v41, %v2017_v44  ;;  %v2347_v43 = vrot.slane %v2342_v37, %v2935_v0  ;;  %v2351_v44 = vrot.slane %v2342_v37, %v2931_v57 }
 0x6e9   : > { %2149 = vmatprep.subr.mxu1 %v2031_v36  ;;  %v1991_v49 = vpop.permute.xlu1 %1990  ;;  %v1945_v61 = vpop.permute.xlu0 %1944 }
 0x6ea   : > { %v1992_v50 = vsel %vm1140_vm10, %v1989_v6, %v1991_v49  ;;  %v1993_v51 = vsel %vm1140_vm10, %v1991_v49, %v1989_v6  ;;  %2150 = vmatpush1.msra.mxu1 %v2030_v10  ;;  %v2373_v6 = vrot.slane %v2364_v30, %v2931_v57  ;;  %v2320_v10 = vld [vmem:[#allocation9 + $0x6] ss:$8 sm:$0x3]  ;;  %v2208_v30 = vld [vmem:[#allocation9] ss:$8 sm:$0x3] }
 0x6eb   : > { %v2006_v32 = vmul.f32 %v1999_v11, %v1993_v51  ;;  %v2007_v52 = vmul.f32 %v2003_v45, %v1992_v50  ;;  %2151 = vmatprep.subr.mxu1 %v3304_v2  ;;  %v2325_v50 = vrot.slane %v2320_v10, %v2935_v0  ;;  %v2329_v51 = vrot.slane %v2320_v10, %v2931_v57 }
 0x6ec   : > { %2152 = vmatpush1.msra.mxu1 %v3297_v1  ;;  %v2213_v37 = vrot.slane %v2208_v30, %v2935_v0 }
 0x6ed   : > { %2153 = vmatprep.subr.mxu1 %v2007_v52  ;;  %v1969_v58 = vpop.permute.xlu1 %1968  ;;  %v1923_v14 = vpop.permute.xlu0 %1922 }
 0x6ee   : > { %v1970_v59 = vsel %vm1116_vm11, %v1967_v47, %v1969_v58  ;;  %v1971_v60 = vsel %vm1116_vm11, %v1969_v58, %v1967_v47  ;;  %2154 = vmatpush1.msra.mxu1 %v2006_v32  ;;  %v2298_v32 = vld [vmem:[#allocation9 + $0x5] ss:$8 sm:$0x3] }
 0x6ef   : > { %v1984_v62 = vmul.f32 %v1977_v54, %v1971_v60  ;;  %v1985_v63 = vmul.f32 %v1981_v55, %v1970_v59  ;;  %v2303_v60 = vrot.slane %v2298_v32, %v2935_v0 }
 0x6f1   : > { %2155 = vmatprep.subr.mxu1 %v1985_v63  ;;  %v1947_v15 = vpop.permute.xlu1 %1946 }
 0x6f2   : > { %v1948_v3 = vsel %vm1092_vm12, %v1945_v61, %v1947_v15  ;;  %v1949_v4 = vsel %vm1092_vm12, %v1947_v15, %v1945_v61  ;;  %2156 = vmatpush1.msra.mxu1 %v1984_v62  ;;  %v2307_v61 = vrot.slane %v2298_v32, %v2931_v57  ;;  %v2274_v62 = vld [vmem:[#allocation9 + $0x3] ss:$8 sm:$0x3] }
 0x6f3   : > { %v1962_v5 = vmul.f32 %v1955_v39, %v1949_v4  ;;  %v1963_v7 = vmul.f32 %v1959_v27, %v1948_v3  ;;  %v2279_v3 = vrot.slane %v2274_v62, %v2935_v0  ;;  %v2283_v4 = vrot.slane %v2274_v62, %v2931_v57 }
 0x6f5   : > { %2157 = vmatprep.subr.mxu1 %v1963_v7  ;;  %v1925_v16 = vpop.permute.xlu1 %1924 }
 0x6f6   : > { %v1926_v17 = vsel %vm1069_vm13, %v1923_v14, %v1925_v16  ;;  %v1927_v18 = vsel %vm1069_vm13, %v1925_v16, %v1923_v14  ;;  %2158 = vmatpush1.msra.mxu1 %v1962_v5  ;;  %v2252_v5 = vld [vmem:[#allocation9 + $0x2] ss:$8 sm:$0x3] }
 0x6f7   : > { %v1940_v19 = vmul.f32 %v1933_v9, %v1927_v18  ;;  %v1941_v20 = vmul.f32 %v1937_v12, %v1926_v17  ;;  %v2257_v18 = vrot.slane %v2252_v5, %v2935_v0 }
 0x6f9   : > { %2159 = vmatprep.subr.mxu1 %v1941_v20  ;;  %v2230_v20 = vld [vmem:[#allocation9 + $0x1] ss:$8 sm:$0x3] }
 0x6fa   : > { %2160 = vmatpush1.msra.mxu1 %v1940_v19  ;;  %v2124_v22 = vpop.permute.xlu0 %2123  ;;  %v2261_v19 = vrot.slane %v2252_v5, %v2931_v57  ;;  %v2239_v29 = vrot.slane %v2230_v20, %v2931_v57 }
 0x6fb   : > { %2605 = vmatmul.mubr.msk.f32.vlgmr.msra.gmra.mxu1 %vm1283_vm14, %v2604_v21 }
 0x7bb   : > { %v2195_v23 = vpop.f32.mrf.mxu1 }
 0x7bc   : > { %v2196_v24 = vadd.f32 %v2195_v23, %v2124_v22 }
 0x7bd   : > { %v2197_v25 = vpop.f32.mrf.mxu1 }
 0x7be   : > { %v3389_v26 = vmax.f32 %v2196_v24, 0.0  ;;  %v2198_v48 = vadd.f32 %v2197_v25, %v2124_v22 }
 0x7c0   : > { %2336 = vrot.lane.b32.xlu0 %v3389_v26, %s2792_s12  ;;  %2358 = vrot.lane.b32.xlu1 %v3389_v26, %s2790_s10  ;;  %v3395_v28 = vmax.f32 %v2198_v48, 0.0 }
 0x7c4   : > { %2314 = vrot.lane.b32.xlu0 %v3389_v26, %s2791_s11  ;;  %2360 = vrot.lane.b32.xlu1 %v3395_v28, %s2790_s10 }
 0x7c8   : > { %2292 = vrot.lane.b32.xlu0 %v3389_v26, %s2793_s13  ;;  %2338 = vrot.lane.b32.xlu1 %v3395_v28, %s2792_s12 }
 0x7cc   : > { %2268 = vrot.lane.b32.xlu0 %v3389_v26, %s2794_s14  ;;  %2316 = vrot.lane.b32.xlu1 %v3395_v28, %s2791_s11 }
 0x7d0   : > { %2246 = vrot.lane.b32.xlu0 %v3389_v26, %s2795_s15  ;;  %2294 = vrot.lane.b32.xlu1 %v3395_v28, %s2793_s13  ;;  %s344_s13 = scalar_lea.vmem %s3500_s8, %s3506_s30 }
 0x7d4   : > { %2224 = vrot.lane.b32.xlu0 %v3389_v26, %s2796_s16  ;;  %2270 = vrot.lane.b32.xlu1 %v3395_v28, %s2794_s14 }
 0x7d8   : > { %2202 = vrot.lane.b32.xlu0 %v3389_v26, %s2797_s17  ;;  %2248 = vrot.lane.b32.xlu1 %v3395_v28, %s2795_s15 }
 0x7dc   : > { %2226 = vrot.lane.b32.xlu1 %v3395_v28, %s2796_s16  ;;  %2403 = vperm.xlu0 %2670, %v3043_v35  }
 0x7e0   : > { %2204 = vrot.lane.b32.xlu1 %v3395_v28, %s2797_s17 }
 0x832   : > { %v2337_v31 = vpop.permute.xlu0 %2336  ;;  %v2359_v33 = vpop.permute.xlu1 %2358 }
 0x836   : > { %v2315_v8 = vpop.permute.xlu0 %2314  ;;  %v2361_v38 = vpop.permute.xlu1 %2360 }
 0x837   : > { %v2362_v41 = vsel %vm1238_vm6, %v2359_v33, %v2361_v38  ;;  %v2363_v42 = vsel %vm1238_vm6, %v2361_v38, %v2359_v33 }
 0x838   : > { %v2376_v35 = vmul.f32 %v2369_v34, %v2362_v41  ;;  %v2377_v40 = vmul.f32 %v2373_v6, %v2363_v42 }
 0x83a   : > { %v2293_v36 = vpop.permute.xlu0 %2292  ;;  %2423 = vmatprep.subr.mxu0 %v2377_v40  ;;  %v2339_v11 = vpop.permute.xlu1 %2338 }
 0x83b   : > { %v2340_v45 = vsel %vm1214_vm7, %v2337_v31, %v2339_v11  ;;  %v2341_v46 = vsel %vm1214_vm7, %v2339_v11, %v2337_v31  ;;  %2424 = vmatpush1.msra.mxu0 %v2376_v35 }
 0x83c   : > { %v2354_v47 = vmul.f32 %v2347_v43, %v2340_v45  ;;  %v2355_v49 = vmul.f32 %v2351_v44, %v2341_v46  ;;  %v2606_v44 = vld [vmem:[%s3496_s4 + $0x20] sm:$0xff] }
 0x83e   : > { %2425 = vmatprep.subr.mxu0 %v2355_v49  ;;  %v2317_v52 = vpop.permute.xlu1 %2316  ;;  %v2269_v56 = vpop.permute.xlu0 %2268 }
 0x83f   : > { %v2318_v54 = vsel %vm1190_vm8, %v2315_v8, %v2317_v52  ;;  %v2319_v55 = vsel %vm1190_vm8, %v2317_v52, %v2315_v8  ;;  %2426 = vmatpush1.msra.mxu0 %v2354_v47  ;;  %v2217_v8 = vrot.slane %v2208_v30, %v2931_v57 }
 0x840   : > { %v2332_v58 = vmul.f32 %v2325_v50, %v2318_v54  ;;  %v2333_v59 = vmul.f32 %v2329_v51, %v2319_v55  ;;  %v2489_v50 = vld [vmem:[%s3498_s6] sm:$0xff] }
 0x842   : > { %2427 = vmatprep.subr.mxu0 %v2333_v59  ;;  %v2295_v63 = vpop.permute.xlu1 %2294  ;;  %v2247_v7 = vpop.permute.xlu0 %2246 }
 0x843   : > { %v2296_v39 = vsel %vm1166_vm9, %v2293_v36, %v2295_v63  ;;  %v2297_v27 = vsel %vm1166_vm9, %v2295_v63, %v2293_v36  ;;  %2428 = vmatpush1.msra.mxu0 %v2332_v58 }
 0x844   : > { %v2310_v13 = vmul.f32 %v2303_v60, %v2296_v39  ;;  %v2311_v15 = vmul.f32 %v2307_v61, %v2297_v27 }
 0x846   : > { %2429 = vmatprep.subr.mxu0 %v2311_v15  ;;  %v2271_v9 = vpop.permute.xlu1 %2270  ;;  %v2225_v24 = vpop.permute.xlu0 %2224 }
 0x847   : > { %v2272_v12 = vsel %vm1140_vm10, %v2269_v56, %v2271_v9  ;;  %v2273_v14 = vsel %vm1140_vm10, %v2271_v9, %v2269_v56  ;;  %2430 = vmatpush1.msra.mxu0 %v2310_v13 }
 0x848   : > { %v2286_v16 = vmul.f32 %v2279_v3, %v2273_v14  ;;  %v2287_v17 = vmul.f32 %v2283_v4, %v2272_v12  ;;  %2431 = vmatprep.subr.mxu0 %v3395_v28  ;;  %v2235_v28 = vrot.slane %v2230_v20, %v2935_v0 }
 0x849   : > { %2432 = vmatpush1.msra.mxu0 %v3389_v26 }
 0x84a   : > { %2433 = vmatprep.subr.mxu0 %v2287_v17  ;;  %v2249_v21 = vpop.permute.xlu1 %2248  ;;  %v2203_v38 = vpop.permute.xlu0 %2202 }
 0x84b   : > { %v2250_v22 = vsel %vm1116_vm11, %v2247_v7, %v2249_v21  ;;  %v2251_v23 = vsel %vm1116_vm11, %v2249_v21, %v2247_v7  ;;  %2434 = vmatpush1.msra.mxu0 %v2286_v16 }
 0x84c   : > { %v2264_v25 = vmul.f32 %v2257_v18, %v2251_v23  ;;  %v2265_v48 = vmul.f32 %v2261_v19, %v2250_v22 }
 0x84e   : > { %2435 = vmatprep.subr.mxu0 %v2265_v48  ;;  %v2227_v26 = vpop.permute.xlu1 %2226 }
 0x84f   : > { %v2228_v31 = vsel %vm1092_vm12, %v2225_v24, %v2227_v26  ;;  %v2229_v33 = vsel %vm1092_vm12, %v2227_v26, %v2225_v24  ;;  %2436 = vmatpush1.msra.mxu0 %v2264_v25 }
 0x850   : > { %v2242_v34 = vmul.f32 %v2235_v28, %v2229_v33  ;;  %v2243_v6 = vmul.f32 %v2239_v29, %v2228_v31 }
 0x852   : > { %2437 = vmatprep.subr.mxu0 %v2243_v6  ;;  %v2205_v41 = vpop.permute.xlu1 %2204 }
 0x853   : > { %v2206_v42 = vsel %vm1069_vm13, %v2203_v38, %v2205_v41  ;;  %v2207_v35 = vsel %vm1069_vm13, %v2205_v41, %v2203_v38  ;;  %2438 = vmatpush1.msra.mxu0 %v2242_v34 }
 0x854   : > { %v2220_v40 = vmul.f32 %v2213_v37, %v2207_v35  ;;  %v2221_v43 = vmul.f32 %v2217_v8, %v2206_v42 }
 0x856   : > { %2439 = vmatprep.subr.mxu0 %v2221_v43 }
 0x857   : > { %2440 = vmatpush1.msra.mxu0 %v2220_v40  ;;  %v2404_v57 = vpop.permute.xlu0 %2403 }
 0x858   : > { %2607 = vmatmul.mubr.msk.f32.vlgmr.msra.gmra.mxu0 %vm1283_vm14, %v2606_v44 }
 0x918   : > { %v2475_v0 = vpop.f32.mrf.mxu0 }
 0x919   : > { %v2476_v10 = vadd.f32 %v2475_v0, %v2404_v57 }
 0x91a   : > { %v2477_v36 = vpop.f32.mrf.mxu0 }
 0x91b   : > { %v2480_v11 = vadd.f32 %v2476_v10, %v3297_v1  ;;  %v2478_v45 = vadd.f32 %v2477_v36, %v2404_v57 }
 0x91d   : > { %v2481_v53 = vadd.f32 %v2478_v45, %v3304_v2  ;;  %v2482_v46 = vmax.f32 %v2480_v11, 0.0  ;;  %v2499_v2 = vld [vmem:[#allocation4] sm:$0x1] }
 0x91f   : > { %v2483_v47 = vmax.f32 %v2481_v53, 0.0 }
 0x921   : > { %v2484_v49 = vadd.f32 %v2483_v47, %v2482_v46 }
 0x923   : > { %2485 = vadd.xlane.f32.xlu1 %v2484_v49 }
 0x9ac   : > { %v2486_v51 = vpop.xlane.xlu1 %2485 }
 0x9ad   : > { %v2488_v32 = vmul.f32 0.00390625, %v2486_v51 }
 0x9af   : > { %v2490_v52 = vmul.f32 %v2489_v50, %v2488_v32 }
 0x9b1   : > { %v2492_v54 = vsel %vm2491_vm15, %v2490_v52, 0.0 }
 0x9b2   : > { %v2493_v55 = vrot.slane %v2492_v54, 4 }
 0x9b4   : > { %v2494_v56 = vadd.f32 %v2493_v55, %v2492_v54 }
 0x9b6   : > { %v2495_v1 = vrot.slane %v2494_v56, 2 }
 0x9b8   : > { %v2496_v58 = vadd.f32 %v2495_v1, %v2494_v56 }
 0x9ba   : > { %v2497_v59 = vrot.slane %v2496_v58, 1 }
 0x9bc   : > { %v2498_v60 = vadd.f32 %v2497_v59, %v2496_v58 }
 0x9be   : > { %v2500_v61 = vadd.f32 %v2499_v2, %v2498_v60 }
 0x9c0   : > { %v2501_v62 = vsub.f32 0.0, %v2500_v61 }
 0x9c2   : > { %v2502_v63 = vmul.f32 1.442695, %v2501_v62 }
 0x9c4   : > { %2685 = vpow2.f32 %v2502_v63 }
 0x9d1   : > { %v2686_v39 = vpop.eup %2685 }
 0x9d2   : > { %v2504_v27 = vadd.f32 1.0, %v2686_v39 }
 0x9d4   : > { %2687 = vrcp.f32 %v2504_v27 }
 0x9e1   : > { %v2688_v13 = vpop.eup %2687 }
 0x9e2   : > { %2508 = vst.msk [vmem:[%s344_s13] sm:$0x1] %vm2507_vm0, %v2688_v13 }
 0x9e3 PF: > { %s22_s29 = sadd.s32 1, %s2781_s29  }
 0x9e4   : > { %p19_p3 = scmp.ge.s32.totalorder %s22_s29, 6  }
 0x9e6   :  { %21 = sbr.rel (!%p19_p3) target bundleno = 5 (0x5), region = 109 }
 0x9eb   :  { %2526 = vsyncpa [#allocation6], 1 }
 0x9ec   :  { %2528 = vsyncpa [#allocation6 + $0x1], 1 }
 0x9ed   :  { %2529 = vsyncpa [#allocation8], 1 }

</bundles_post_ra>
